<compile_context>
chip_gen: v6e
topology: v6e:2x2x1
jax: 0.10.0
libtpu: 0.0.40
codegen_flags: <defaults>
</compile_context>

<pallas_src>
import jax
import jax.numpy as jnp
from jax.experimental import pallas as pl
from jax.experimental.pallas import tpu as pltpu

# ---- small DistilBERT-like config (synthetic, deterministic weights) ----
VOCAB = 100      # vocab size
MAX_POS = 16     # max position embeddings
D = 32           # hidden dim
H = 4            # attention heads
HD = D // H      # dim per head
FFN = 64         # ffn hidden dim
LAYERS = 2       # number of transformer layers
EPS = 1e-12      # DistilBERT LayerNorm eps
VW = max(3 * D, FFN, D)   # packed-vector width (96)


# ---------------- fused Pallas kernel ----------------

def text_encoder_kernel(emb_ref, bias_ref, embln_ref,
                        wqkv_ref, wo_ref, w1_ref, w2_ref, vecs_ref,
                        o_ref):
    """Embedding LN + LAYERS x (MHSA + FFN) for the WHOLE batch; writes CLS rows.

    emb_ref  : (B*S, D)      word+pos embeddings (pre-LN), f32
    bias_ref : (B*H, 1, S)   additive attention bias (0 keep / -1e9 pad), f32
    embln_ref: (2, D)        embedding LayerNorm gamma / beta
    wqkv_ref : (L, D, 3D)    fused QKV weights, bf16 (softmax scale folded in)
    wo_ref   : (L, D, D)     attention output weights, bf16
    w1_ref   : (L, D, FFN)   ffn.lin1 weights, bf16
    w2_ref   : (L, FFN, D)   ffn.lin2 weights, bf16
    vecs_ref : (L, 8, VW)    packed biases + LN params, f32
    o_ref    : (B, D)        CLS hidden state (target_token_idx = 0)
    """
    S = bias_ref.shape[-1]
    B = bias_ref.shape[0] // H

    x = emb_ref[...].astype(jnp.float32)          # (B*S, D) -- stays 2D throughout
    bias = bias_ref[...]                          # (B*H, 1, S)

    def ln(t, g, b):
        # one fused reduction pass: E[x], E[x^2]
        mu = jnp.mean(t, axis=-1, keepdims=True)
        ex2 = jnp.mean(t * t, axis=-1, keepdims=True)
        var = jnp.maximum(ex2 - mu * mu, 0.0)
        return (t - mu) * jax.lax.rsqrt(var + EPS) * g + b

    # ---- embedding LayerNorm ----
    x = ln(x, embln_ref[0:1, :], embln_ref[1:2, :])

    # ---- transformer layers (static unroll, everything VMEM-resident) ----
    for l in range(LAYERS):
        vec = vecs_ref[l]                          # (8, VW) f32 packed params
        bqkv = vec[0:1, :3 * D]
        bo, g1, b1 = vec[1:2, :D], vec[2:3, :D], vec[3:4, :D]
        bf1 = vec[4:5, :FFN]
        bf2, g2, b2 = vec[5:6, :D], vec[6:7, :D], vec[7:8, :D]

        # fused QKV projection (bf16 operands, f32 accumulate); scale folded in
        qkv = jnp.dot(x.astype(jnp.bfloat16), wqkv_ref[l],
                      preferred_element_type=jnp.float32) + bqkv   # (B*S, 3D)

        # (batch, head) -> one merged leading einsum batch axis of size B*H
        def split(col0):
            return jnp.stack(
                [qkv[b * S:(b + 1) * S, col0 + h * HD:col0 + (h + 1) * HD]
                 for b in range(B) for h in range(H)], axis=0)      # (B*H, S, HD)
        qh, kh, vh = split(0), split(D), split(2 * D)

        sc = jnp.einsum('nqd,nkd->nqk',
                        qh.astype(jnp.bfloat16), kh.astype(jnp.bfloat16),
                        preferred_element_type=jnp.float32)         # (B*H, S, S)
        sc = sc + bias                                              # additive mask
        sc = sc - jnp.max(sc, axis=-1, keepdims=True)
        p = jnp.exp(sc)
        p = p * pl.reciprocal(jnp.sum(p, axis=-1, keepdims=True), approx=True)
        ctx = jnp.einsum('nqk,nkd->nqd',
                         p.astype(jnp.bfloat16), vh.astype(jnp.bfloat16),
                         preferred_element_type=jnp.float32)        # (B*H, S, HD)

        # merge heads back -> (B*S, D)
        ctx = jnp.concatenate(
            [jnp.concatenate([ctx[b * H + h] for h in range(H)], axis=-1)
             for b in range(B)], axis=0)

        # attention output projection + residual + sa_layer_norm
        attn = jnp.dot(ctx.astype(jnp.bfloat16), wo_ref[l],
                       preferred_element_type=jnp.float32) + bo
        x = ln(attn + x, g1, b1)

        # feed-forward (exact GELU, as in DistilBERT) + residual + output LN
        hdn = jnp.dot(x.astype(jnp.bfloat16), w1_ref[l],
                      preferred_element_type=jnp.float32) + bf1
        hdn = 0.5 * hdn * (1.0 + jax.lax.erf(hdn * (2.0 ** -0.5)))
        ffn = jnp.dot(hdn.astype(jnp.bfloat16), w2_ref[l],
                      preferred_element_type=jnp.float32) + bf2
        x = ln(ffn + x, g2, b2)

    # only the CLS rows leave the chip (target_token_idx = 0)
    o_ref[...] = jnp.concatenate(
        [x[b * S:b * S + 1, :] for b in range(B)], axis=0).astype(o_ref.dtype)


# ---------------- parameter preparation (fuse / pack / bf16) ----------------

def prepare_fused_params(params):
    """Fuse QKV (scale folded into Wq/bq), cast weights bf16, pack 1-D params."""
    scale = float(HD) ** -0.5

    def pad_row(v):
        v = v.reshape(1, -1)
        return jnp.pad(v, ((0, 0), (0, VW - v.shape[-1])))

    wqkv, wo, w1, w2, vecs = [], [], [], [], []
    for (wq, bq, wk, bk, wv, bv, wo_l, bo_l,
         g1, b1, w1_l, bf1, w2_l, bf2, g2, b2) in params['layers']:
        wqkv.append(jnp.concatenate([wq * scale, wk, wv], axis=1).astype(jnp.bfloat16))
        wo.append(wo_l.astype(jnp.bfloat16))
        w1.append(w1_l.astype(jnp.bfloat16))
        w2.append(w2_l.astype(jnp.bfloat16))
        bqkv = jnp.concatenate([bq * scale, bk, bv], axis=1)
        vecs.append(jnp.concatenate(
            [pad_row(bqkv), pad_row(bo_l), pad_row(g1), pad_row(b1),
             pad_row(bf1), pad_row(bf2), pad_row(g2), pad_row(b2)], axis=0))

    emb_ln = jnp.concatenate([params['emb_ln_g'], params['emb_ln_b']], axis=0)
    return {
        'emb_ln': emb_ln.astype(jnp.float32),            # (2, D)
        'wqkv': jnp.stack(wqkv, axis=0),                 # (L, D, 3D) bf16
        'wo':   jnp.stack(wo, axis=0),                   # (L, D, D)  bf16
        'w1':   jnp.stack(w1, axis=0),                   # (L, D, FFN) bf16
        'w2':   jnp.stack(w2, axis=0),                   # (L, FFN, D) bf16
        'vecs': jnp.stack(vecs, axis=0).astype(jnp.float32),  # (L, 8, VW) f32
    }


# ---------------- wrapper ----------------

def text_encoder_forward(params, input_ids, attention_mask):
    """Equivalent of TextEncoder.forward: DistilBERT, return hidden[:, 0, :]."""
    B, S = input_ids.shape
    # embedding lookup is glue (gather) in plain JAX; everything else is Pallas
    word = jnp.take(params['word_emb'], input_ids, axis=0)        # (B, S, D)
    pos = params['pos_emb'][:S]                                   # (S, D)
    emb = (word + pos[None, :, :]).astype(jnp.float32).reshape(B * S, D)

    # additive attention bias, replicated per head in (b, h) order
    bias = (attention_mask.astype(jnp.float32) - 1.0) * 1e9       # (B, S)
    bias = jnp.broadcast_to(bias[:, None, None, :], (B, H, 1, S)).reshape(B * H, 1, S)

    f = prepare_fused_params(params)
    operands = (emb, bias, f['emb_ln'], f['wqkv'], f['wo'], f['w1'], f['w2'], f['vecs'])

    out = pl.pallas_call(
        text_encoder_kernel,
        out_shape=jax.ShapeDtypeStruct((B, D), jnp.float32),
        in_specs=[pl.BlockSpec(memory_space=pltpu.MemorySpace.VMEM)
                  for _ in operands],
        out_specs=pl.BlockSpec(memory_space=pltpu.MemorySpace.VMEM),
    )(*operands)
    return out                                                     # (B, D)


# ---------------- deterministic parameter init ----------------

def init_distilbert_params(key):
    keys = iter(jax.random.split(key, 8 + 8 * LAYERS))

    def nrm(shape):
        return (0.02 * jax.random.normal(next(keys), shape)).astype(jnp.float32)

    p = {
        'word_emb': nrm((VOCAB, D)),
        'pos_emb': nrm((MAX_POS, D)),
        'emb_ln_g': jnp.ones((1, D), jnp.float32),
        'emb_ln_b': jnp.zeros((1, D), jnp.float32),
    }
    layers = []
    for _ in range(LAYERS):
        layers.append((
            nrm((D, D)), jnp.zeros((1, D), jnp.float32),      # q_lin  (W, b)
            nrm((D, D)), jnp.zeros((1, D), jnp.float32),      # k_lin
            nrm((D, D)), jnp.zeros((1, D), jnp.float32),      # v_lin
            nrm((D, D)), jnp.zeros((1, D), jnp.float32),      # out_lin
            jnp.ones((1, D), jnp.float32), jnp.zeros((1, D), jnp.float32),   # sa_layer_norm
            nrm((D, FFN)), jnp.zeros((1, FFN), jnp.float32),  # ffn.lin1
            nrm((FFN, D)), jnp.zeros((1, D), jnp.float32),    # ffn.lin2
            jnp.ones((1, D), jnp.float32), jnp.zeros((1, D), jnp.float32),   # output_layer_norm
        ))
    p['layers'] = layers
    return p


if __name__ == "__main__":
    key = jax.random.PRNGKey(0)
    kp, kid = jax.random.split(key)
    params = init_distilbert_params(kp)

    B, S = 2, 8
    input_ids = jax.random.randint(kid, (B, S), 0, VOCAB, dtype=jnp.int32)
    attention_mask = jnp.ones((B, S), jnp.int32).at[1, 6:].set(0)  # pad last 2 tokens of seq 1

    out = jax.jit(text_encoder_forward)(params, input_ids, attention_mask)
    out = jax.block_until_ready(out)
    assert out.shape == (B, D) and out.dtype == jnp.float32
    assert bool(jnp.all(jnp.isfinite(out)))
    print("KERNEL_OK")
</pallas_src>

<mosaic_0001>
module attributes {stable_mosaic.version = 11 : i64} {
  func.func @text_encoder_kernel(%arg0: memref<16x32xf32, #tpu.memory_space<vmem>>, %arg1: memref<8x1x8xf32, #tpu.memory_space<vmem>>, %arg2: memref<2x32xf32, #tpu.memory_space<vmem>>, %arg3: memref<2x32x96xbf16, #tpu.memory_space<vmem>>, %arg4: memref<2x32x32xbf16, #tpu.memory_space<vmem>>, %arg5: memref<2x32x64xbf16, #tpu.memory_space<vmem>>, %arg6: memref<2x64x32xbf16, #tpu.memory_space<vmem>>, %arg7: memref<2x8x96xf32, #tpu.memory_space<vmem>>, %arg8: memref<2x32xf32, #tpu.memory_space<vmem>>) attributes {dimension_semantics = [], scalar_prefetch = 0 : i64, scratch_operands = 0 : i64, tpu.core_type = #tpu.core_type<tc>} {
    %c0 = arith.constant 0 : index
    %c0_0 = arith.constant 0 : index
    %0 = vector.load %arg0[%c0, %c0_0] : memref<16x32xf32, #tpu.memory_space<vmem>>, vector<16x32xf32>
    %c0_1 = arith.constant 0 : index
    %c0_2 = arith.constant 0 : index
    %c0_3 = arith.constant 0 : index
    %1 = vector.load %arg1[%c0_1, %c0_2, %c0_3] : memref<8x1x8xf32, #tpu.memory_space<vmem>>, vector<8x1x8xf32>
    %c0_4 = arith.constant 0 : index
    %c0_5 = arith.constant 0 : index
    %2 = vector.load %arg2[%c0_4, %c0_5] : memref<2x32xf32, #tpu.memory_space<vmem>>, vector<1x32xf32>
    %c1 = arith.constant 1 : index
    %c0_6 = arith.constant 0 : index
    %3 = vector.load %arg2[%c1, %c0_6] : memref<2x32xf32, #tpu.memory_space<vmem>>, vector<1x32xf32>
    %cst = arith.constant dense<0.000000e+00> : vector<16xf32>
    %4 = vector.multi_reduction <add>, %0, %cst [1] : vector<16x32xf32> to vector<16xf32>
    %5 = vector.shape_cast %4 : vector<16xf32> to vector<16x1xf32>
    %cst_7 = arith.constant 3.200000e+01 : f32
    %6 = vector.broadcast %cst_7 : f32 to vector<16x1xf32>
    %7 = arith.divf %5, %6 : vector<16x1xf32>
    %8 = arith.mulf %0, %0 : vector<16x32xf32>
    %cst_8 = arith.constant dense<0.000000e+00> : vector<16xf32>
    %9 = vector.multi_reduction <add>, %8, %cst_8 [1] : vector<16x32xf32> to vector<16xf32>
    %10 = vector.shape_cast %9 : vector<16xf32> to vector<16x1xf32>
    %cst_9 = arith.constant 3.200000e+01 : f32
    %11 = vector.broadcast %cst_9 : f32 to vector<16x1xf32>
    %12 = arith.divf %10, %11 : vector<16x1xf32>
    %13 = arith.mulf %7, %7 : vector<16x1xf32>
    %14 = arith.subf %12, %13 : vector<16x1xf32>
    %cst_10 = arith.constant 0.000000e+00 : f32
    %15 = vector.broadcast %cst_10 : f32 to vector<16x1xf32>
    %16 = arith.maximumf %14, %15 : vector<16x1xf32>
    %17 = vector.broadcast %7 : vector<16x1xf32> to vector<16x32xf32>
    %18 = arith.subf %0, %17 : vector<16x32xf32>
    %cst_11 = arith.constant 9.99999996E-13 : f32
    %19 = vector.broadcast %cst_11 : f32 to vector<16x1xf32>
    %20 = arith.addf %16, %19 : vector<16x1xf32>
    %21 = math.rsqrt %20 : vector<16x1xf32>
    %22 = vector.broadcast %21 : vector<16x1xf32> to vector<16x32xf32>
    %23 = arith.mulf %18, %22 : vector<16x32xf32>
    %24 = vector.broadcast %2 : vector<1x32xf32> to vector<16x32xf32>
    %25 = arith.mulf %23, %24 : vector<16x32xf32>
    %26 = vector.broadcast %3 : vector<1x32xf32> to vector<16x32xf32>
    %27 = arith.addf %25, %26 : vector<16x32xf32>
    %c0_12 = arith.constant 0 : index
    %c0_13 = arith.constant 0 : index
    %c0_14 = arith.constant 0 : index
    %28 = vector.load %arg7[%c0_12, %c0_13, %c0_14] : memref<2x8x96xf32, #tpu.memory_space<vmem>>, vector<1x8x96xf32>
    %29 = vector.shape_cast %28 : vector<1x8x96xf32> to vector<8x96xf32>
    %30 = vector.extract_strided_slice %29 {offsets = [0, 0], sizes = [1, 96], strides = [1, 1]} : vector<8x96xf32> to vector<1x96xf32>
    %31 = vector.extract_strided_slice %29 {offsets = [1, 0], sizes = [1, 32], strides = [1, 1]} : vector<8x96xf32> to vector<1x32xf32>
    %32 = vector.extract_strided_slice %29 {offsets = [2, 0], sizes = [1, 32], strides = [1, 1]} : vector<8x96xf32> to vector<1x32xf32>
    %33 = vector.extract_strided_slice %29 {offsets = [3, 0], sizes = [1, 32], strides = [1, 1]} : vector<8x96xf32> to vector<1x32xf32>
    %34 = vector.extract_strided_slice %29 {offsets = [4, 0], sizes = [1, 64], strides = [1, 1]} : vector<8x96xf32> to vector<1x64xf32>
    %35 = vector.extract_strided_slice %29 {offsets = [5, 0], sizes = [1, 32], strides = [1, 1]} : vector<8x96xf32> to vector<1x32xf32>
    %36 = vector.extract_strided_slice %29 {offsets = [6, 0], sizes = [1, 32], strides = [1, 1]} : vector<8x96xf32> to vector<1x32xf32>
    %37 = vector.extract_strided_slice %29 {offsets = [7, 0], sizes = [1, 32], strides = [1, 1]} : vector<8x96xf32> to vector<1x32xf32>
    %38 = arith.truncf %27 : vector<16x32xf32> to vector<16x32xbf16>
    %c0_15 = arith.constant 0 : index
    %c0_16 = arith.constant 0 : index
    %c0_17 = arith.constant 0 : index
    %39 = vector.load %arg3[%c0_15, %c0_16, %c0_17] : memref<2x32x96xbf16, #tpu.memory_space<vmem>>, vector<1x32x96xbf16>
    %40 = vector.shape_cast %39 : vector<1x32x96xbf16> to vector<32x96xbf16>
    %cst_18 = arith.constant dense<0.000000e+00> : vector<16x96xf32>
    %41 = tpu.matmul %38, %40, %cst_18 {dimension_numbers = #tpu.dot_dimension_numbers<[1], [0], [0], [1], [0, 0, 1, 1], [], []>} : vector<16x32xbf16>, vector<32x96xbf16>, vector<16x96xf32> -> vector<16x96xf32>
    %42 = vector.broadcast %30 : vector<1x96xf32> to vector<16x96xf32>
    %43 = arith.addf %41, %42 : vector<16x96xf32>
    %44 = vector.extract_strided_slice %43 {offsets = [0, 0], sizes = [8, 8], strides = [1, 1]} : vector<16x96xf32> to vector<8x8xf32>
    %45 = vector.extract_strided_slice %43 {offsets = [0, 8], sizes = [8, 8], strides = [1, 1]} : vector<16x96xf32> to vector<8x8xf32>
    %46 = vector.extract_strided_slice %43 {offsets = [0, 16], sizes = [8, 8], strides = [1, 1]} : vector<16x96xf32> to vector<8x8xf32>
    %47 = vector.extract_strided_slice %43 {offsets = [0, 24], sizes = [8, 8], strides = [1, 1]} : vector<16x96xf32> to vector<8x8xf32>
    %48 = vector.extract_strided_slice %43 {offsets = [8, 0], sizes = [8, 8], strides = [1, 1]} : vector<16x96xf32> to vector<8x8xf32>
    %49 = vector.extract_strided_slice %43 {offsets = [8, 8], sizes = [8, 8], strides = [1, 1]} : vector<16x96xf32> to vector<8x8xf32>
    %50 = vector.extract_strided_slice %43 {offsets = [8, 16], sizes = [8, 8], strides = [1, 1]} : vector<16x96xf32> to vector<8x8xf32>
    %51 = vector.extract_strided_slice %43 {offsets = [8, 24], sizes = [8, 8], strides = [1, 1]} : vector<16x96xf32> to vector<8x8xf32>
    %52 = vector.shape_cast %44 : vector<8x8xf32> to vector<1x8x8xf32>
    %53 = vector.shape_cast %45 : vector<8x8xf32> to vector<1x8x8xf32>
    %54 = vector.shape_cast %46 : vector<8x8xf32> to vector<1x8x8xf32>
    %55 = vector.shape_cast %47 : vector<8x8xf32> to vector<1x8x8xf32>
    %56 = vector.shape_cast %48 : vector<8x8xf32> to vector<1x8x8xf32>
    %57 = vector.shape_cast %49 : vector<8x8xf32> to vector<1x8x8xf32>
    %58 = vector.shape_cast %50 : vector<8x8xf32> to vector<1x8x8xf32>
    %59 = vector.shape_cast %51 : vector<8x8xf32> to vector<1x8x8xf32>
    %60 = tpu.concatenate %52, %53, %54, %55, %56, %57, %58, %59 in 0 : vector<1x8x8xf32>, vector<1x8x8xf32>, vector<1x8x8xf32>, vector<1x8x8xf32>, vector<1x8x8xf32>, vector<1x8x8xf32>, vector<1x8x8xf32>, vector<1x8x8xf32> -> vector<8x8x8xf32>
    %61 = vector.extract_strided_slice %43 {offsets = [0, 32], sizes = [8, 8], strides = [1, 1]} : vector<16x96xf32> to vector<8x8xf32>
    %62 = vector.extract_strided_slice %43 {offsets = [0, 40], sizes = [8, 8], strides = [1, 1]} : vector<16x96xf32> to vector<8x8xf32>
    %63 = vector.extract_strided_slice %43 {offsets = [0, 48], sizes = [8, 8], strides = [1, 1]} : vector<16x96xf32> to vector<8x8xf32>
    %64 = vector.extract_strided_slice %43 {offsets = [0, 56], sizes = [8, 8], strides = [1, 1]} : vector<16x96xf32> to vector<8x8xf32>
    %65 = vector.extract_strided_slice %43 {offsets = [8, 32], sizes = [8, 8], strides = [1, 1]} : vector<16x96xf32> to vector<8x8xf32>
    %66 = vector.extract_strided_slice %43 {offsets = [8, 40], sizes = [8, 8], strides = [1, 1]} : vector<16x96xf32> to vector<8x8xf32>
    %67 = vector.extract_strided_slice %43 {offsets = [8, 48], sizes = [8, 8], strides = [1, 1]} : vector<16x96xf32> to vector<8x8xf32>
    %68 = vector.extract_strided_slice %43 {offsets = [8, 56], sizes = [8, 8], strides = [1, 1]} : vector<16x96xf32> to vector<8x8xf32>
    %69 = vector.shape_cast %61 : vector<8x8xf32> to vector<1x8x8xf32>
    %70 = vector.shape_cast %62 : vector<8x8xf32> to vector<1x8x8xf32>
    %71 = vector.shape_cast %63 : vector<8x8xf32> to vector<1x8x8xf32>
    %72 = vector.shape_cast %64 : vector<8x8xf32> to vector<1x8x8xf32>
    %73 = vector.shape_cast %65 : vector<8x8xf32> to vector<1x8x8xf32>
    %74 = vector.shape_cast %66 : vector<8x8xf32> to vector<1x8x8xf32>
    %75 = vector.shape_cast %67 : vector<8x8xf32> to vector<1x8x8xf32>
    %76 = vector.shape_cast %68 : vector<8x8xf32> to vector<1x8x8xf32>
    %77 = tpu.concatenate %69, %70, %71, %72, %73, %74, %75, %76 in 0 : vector<1x8x8xf32>, vector<1x8x8xf32>, vector<1x8x8xf32>, vector<1x8x8xf32>, vector<1x8x8xf32>, vector<1x8x8xf32>, vector<1x8x8xf32>, vector<1x8x8xf32> -> vector<8x8x8xf32>
    %78 = vector.extract_strided_slice %43 {offsets = [0, 64], sizes = [8, 8], strides = [1, 1]} : vector<16x96xf32> to vector<8x8xf32>
    %79 = vector.extract_strided_slice %43 {offsets = [0, 72], sizes = [8, 8], strides = [1, 1]} : vector<16x96xf32> to vector<8x8xf32>
    %80 = vector.extract_strided_slice %43 {offsets = [0, 80], sizes = [8, 8], strides = [1, 1]} : vector<16x96xf32> to vector<8x8xf32>
    %81 = vector.extract_strided_slice %43 {offsets = [0, 88], sizes = [8, 8], strides = [1, 1]} : vector<16x96xf32> to vector<8x8xf32>
    %82 = vector.extract_strided_slice %43 {offsets = [8, 64], sizes = [8, 8], strides = [1, 1]} : vector<16x96xf32> to vector<8x8xf32>
    %83 = vector.extract_strided_slice %43 {offsets = [8, 72], sizes = [8, 8], strides = [1, 1]} : vector<16x96xf32> to vector<8x8xf32>
    %84 = vector.extract_strided_slice %43 {offsets = [8, 80], sizes = [8, 8], strides = [1, 1]} : vector<16x96xf32> to vector<8x8xf32>
    %85 = vector.extract_strided_slice %43 {offsets = [8, 88], sizes = [8, 8], strides = [1, 1]} : vector<16x96xf32> to vector<8x8xf32>
    %86 = vector.shape_cast %78 : vector<8x8xf32> to vector<1x8x8xf32>
    %87 = vector.shape_cast %79 : vector<8x8xf32> to vector<1x8x8xf32>
    %88 = vector.shape_cast %80 : vector<8x8xf32> to vector<1x8x8xf32>
    %89 = vector.shape_cast %81 : vector<8x8xf32> to vector<1x8x8xf32>
    %90 = vector.shape_cast %82 : vector<8x8xf32> to vector<1x8x8xf32>
    %91 = vector.shape_cast %83 : vector<8x8xf32> to vector<1x8x8xf32>
    %92 = vector.shape_cast %84 : vector<8x8xf32> to vector<1x8x8xf32>
    %93 = vector.shape_cast %85 : vector<8x8xf32> to vector<1x8x8xf32>
    %94 = tpu.concatenate %86, %87, %88, %89, %90, %91, %92, %93 in 0 : vector<1x8x8xf32>, vector<1x8x8xf32>, vector<1x8x8xf32>, vector<1x8x8xf32>, vector<1x8x8xf32>, vector<1x8x8xf32>, vector<1x8x8xf32>, vector<1x8x8xf32> -> vector<8x8x8xf32>
    %95 = arith.truncf %60 : vector<8x8x8xf32> to vector<8x8x8xbf16>
    %96 = arith.truncf %77 : vector<8x8x8xf32> to vector<8x8x8xbf16>
    "tpu.trace_start"() <{level = 10 : i32, message = "nqd,nkd->nqk"}> : () -> ()
    %cst_19 = arith.constant dense<0.000000e+00> : vector<8x8x8xf32>
    %97 = tpu.matmul %95, %96, %cst_19 {dimension_numbers = #tpu.dot_dimension_numbers<[2], [2], [1], [1], [0, 0, 0, 1, 1, 1], [0], [0]>} : vector<8x8x8xbf16>, vector<8x8x8xbf16>, vector<8x8x8xf32> -> vector<8x8x8xf32>
    "tpu.trace_stop"() : () -> ()
    %98 = vector.broadcast %1 : vector<8x1x8xf32> to vector<8x8x8xf32>
    %99 = arith.addf %97, %98 : vector<8x8x8xf32>
    %cst_20 = arith.constant dense<0xFF800000> : vector<8x8xf32>
    %100 = vector.multi_reduction <maximumf>, %99, %cst_20 [2] : vector<8x8x8xf32> to vector<8x8xf32>
    %101 = vector.shape_cast %100 : vector<8x8xf32> to vector<8x8x1xf32>
    %102 = vector.broadcast %101 : vector<8x8x1xf32> to vector<8x8x8xf32>
    %103 = arith.subf %99, %102 : vector<8x8x8xf32>
    %104 = math.exp %103 : vector<8x8x8xf32>
    %cst_21 = arith.constant dense<0.000000e+00> : vector<8x8xf32>
    %105 = vector.multi_reduction <add>, %104, %cst_21 [2] : vector<8x8x8xf32> to vector<8x8xf32>
    %106 = vector.shape_cast %105 : vector<8x8xf32> to vector<8x8x1xf32>
    %107 = tpu.reciprocal %106 {approx = true} : vector<8x8x1xf32> -> vector<8x8x1xf32>
    %108 = vector.broadcast %107 : vector<8x8x1xf32> to vector<8x8x8xf32>
    %109 = arith.mulf %104, %108 : vector<8x8x8xf32>
    %110 = arith.truncf %109 : vector<8x8x8xf32> to vector<8x8x8xbf16>
    %111 = arith.truncf %94 : vector<8x8x8xf32> to vector<8x8x8xbf16>
    "tpu.trace_start"() <{level = 10 : i32, message = "nqk,nkd->nqd"}> : () -> ()
    %cst_22 = arith.constant dense<0.000000e+00> : vector<8x8x8xf32>
    %112 = tpu.matmul %110, %111, %cst_22 {dimension_numbers = #tpu.dot_dimension_numbers<[2], [1], [1], [2], [0, 0, 0, 1, 1, 2], [0], [0]>} : vector<8x8x8xbf16>, vector<8x8x8xbf16>, vector<8x8x8xf32> -> vector<8x8x8xf32>
    "tpu.trace_stop"() : () -> ()
    %113 = vector.extract_strided_slice %112 {offsets = [0, 0, 0], sizes = [1, 8, 8], strides = [1, 1, 1]} : vector<8x8x8xf32> to vector<1x8x8xf32>
    %114 = vector.shape_cast %113 : vector<1x8x8xf32> to vector<8x8xf32>
    %115 = vector.extract_strided_slice %112 {offsets = [1, 0, 0], sizes = [1, 8, 8], strides = [1, 1, 1]} : vector<8x8x8xf32> to vector<1x8x8xf32>
    %116 = vector.shape_cast %115 : vector<1x8x8xf32> to vector<8x8xf32>
    %117 = vector.extract_strided_slice %112 {offsets = [2, 0, 0], sizes = [1, 8, 8], strides = [1, 1, 1]} : vector<8x8x8xf32> to vector<1x8x8xf32>
    %118 = vector.shape_cast %117 : vector<1x8x8xf32> to vector<8x8xf32>
    %119 = vector.extract_strided_slice %112 {offsets = [3, 0, 0], sizes = [1, 8, 8], strides = [1, 1, 1]} : vector<8x8x8xf32> to vector<1x8x8xf32>
    %120 = vector.shape_cast %119 : vector<1x8x8xf32> to vector<8x8xf32>
    %121 = tpu.concatenate %114, %116, %118, %120 in 1 : vector<8x8xf32>, vector<8x8xf32>, vector<8x8xf32>, vector<8x8xf32> -> vector<8x32xf32>
    %122 = vector.extract_strided_slice %112 {offsets = [4, 0, 0], sizes = [1, 8, 8], strides = [1, 1, 1]} : vector<8x8x8xf32> to vector<1x8x8xf32>
    %123 = vector.shape_cast %122 : vector<1x8x8xf32> to vector<8x8xf32>
    %124 = vector.extract_strided_slice %112 {offsets = [5, 0, 0], sizes = [1, 8, 8], strides = [1, 1, 1]} : vector<8x8x8xf32> to vector<1x8x8xf32>
    %125 = vector.shape_cast %124 : vector<1x8x8xf32> to vector<8x8xf32>
    %126 = vector.extract_strided_slice %112 {offsets = [6, 0, 0], sizes = [1, 8, 8], strides = [1, 1, 1]} : vector<8x8x8xf32> to vector<1x8x8xf32>
    %127 = vector.shape_cast %126 : vector<1x8x8xf32> to vector<8x8xf32>
    %128 = vector.extract_strided_slice %112 {offsets = [7, 0, 0], sizes = [1, 8, 8], strides = [1, 1, 1]} : vector<8x8x8xf32> to vector<1x8x8xf32>
    %129 = vector.shape_cast %128 : vector<1x8x8xf32> to vector<8x8xf32>
    %130 = tpu.concatenate %123, %125, %127, %129 in 1 : vector<8x8xf32>, vector<8x8xf32>, vector<8x8xf32>, vector<8x8xf32> -> vector<8x32xf32>
    %131 = tpu.concatenate %121, %130 in 0 : vector<8x32xf32>, vector<8x32xf32> -> vector<16x32xf32>
    %132 = arith.truncf %131 : vector<16x32xf32> to vector<16x32xbf16>
    %c0_23 = arith.constant 0 : index
    %c0_24 = arith.constant 0 : index
    %c0_25 = arith.constant 0 : index
    %133 = vector.load %arg4[%c0_23, %c0_24, %c0_25] : memref<2x32x32xbf16, #tpu.memory_space<vmem>>, vector<1x32x32xbf16>
    %134 = vector.shape_cast %133 : vector<1x32x32xbf16> to vector<32x32xbf16>
    %cst_26 = arith.constant dense<0.000000e+00> : vector<16x32xf32>
    %135 = tpu.matmul %132, %134, %cst_26 {dimension_numbers = #tpu.dot_dimension_numbers<[1], [0], [0], [1], [0, 0, 1, 1], [], []>} : vector<16x32xbf16>, vector<32x32xbf16>, vector<16x32xf32> -> vector<16x32xf32>
    %136 = vector.broadcast %31 : vector<1x32xf32> to vector<16x32xf32>
    %137 = arith.addf %135, %136 : vector<16x32xf32>
    %138 = arith.addf %137, %27 : vector<16x32xf32>
    %cst_27 = arith.constant dense<0.000000e+00> : vector<16xf32>
    %139 = vector.multi_reduction <add>, %138, %cst_27 [1] : vector<16x32xf32> to vector<16xf32>
    %140 = vector.shape_cast %139 : vector<16xf32> to vector<16x1xf32>
    %cst_28 = arith.constant 3.200000e+01 : f32
    %141 = vector.broadcast %cst_28 : f32 to vector<16x1xf32>
    %142 = arith.divf %140, %141 : vector<16x1xf32>
    %143 = arith.mulf %138, %138 : vector<16x32xf32>
    %cst_29 = arith.constant dense<0.000000e+00> : vector<16xf32>
    %144 = vector.multi_reduction <add>, %143, %cst_29 [1] : vector<16x32xf32> to vector<16xf32>
    %145 = vector.shape_cast %144 : vector<16xf32> to vector<16x1xf32>
    %cst_30 = arith.constant 3.200000e+01 : f32
    %146 = vector.broadcast %cst_30 : f32 to vector<16x1xf32>
    %147 = arith.divf %145, %146 : vector<16x1xf32>
    %148 = arith.mulf %142, %142 : vector<16x1xf32>
    %149 = arith.subf %147, %148 : vector<16x1xf32>
    %cst_31 = arith.constant 0.000000e+00 : f32
    %150 = vector.broadcast %cst_31 : f32 to vector<16x1xf32>
    %151 = arith.maximumf %149, %150 : vector<16x1xf32>
    %152 = vector.broadcast %142 : vector<16x1xf32> to vector<16x32xf32>
    %153 = arith.subf %138, %152 : vector<16x32xf32>
    %cst_32 = arith.constant 9.99999996E-13 : f32
    %154 = vector.broadcast %cst_32 : f32 to vector<16x1xf32>
    %155 = arith.addf %151, %154 : vector<16x1xf32>
    %156 = math.rsqrt %155 : vector<16x1xf32>
    %157 = vector.broadcast %156 : vector<16x1xf32> to vector<16x32xf32>
    %158 = arith.mulf %153, %157 : vector<16x32xf32>
    %159 = vector.broadcast %32 : vector<1x32xf32> to vector<16x32xf32>
    %160 = arith.mulf %158, %159 : vector<16x32xf32>
    %161 = vector.broadcast %33 : vector<1x32xf32> to vector<16x32xf32>
    %162 = arith.addf %160, %161 : vector<16x32xf32>
    %163 = arith.truncf %162 : vector<16x32xf32> to vector<16x32xbf16>
    %c0_33 = arith.constant 0 : index
    %c0_34 = arith.constant 0 : index
    %c0_35 = arith.constant 0 : index
    %164 = vector.load %arg5[%c0_33, %c0_34, %c0_35] : memref<2x32x64xbf16, #tpu.memory_space<vmem>>, vector<1x32x64xbf16>
    %165 = vector.shape_cast %164 : vector<1x32x64xbf16> to vector<32x64xbf16>
    %cst_36 = arith.constant dense<0.000000e+00> : vector<16x64xf32>
    %166 = tpu.matmul %163, %165, %cst_36 {dimension_numbers = #tpu.dot_dimension_numbers<[1], [0], [0], [1], [0, 0, 1, 1], [], []>} : vector<16x32xbf16>, vector<32x64xbf16>, vector<16x64xf32> -> vector<16x64xf32>
    %167 = vector.broadcast %34 : vector<1x64xf32> to vector<16x64xf32>
    %168 = arith.addf %166, %167 : vector<16x64xf32>
    %cst_37 = arith.constant 5.000000e-01 : f32
    %169 = vector.broadcast %cst_37 : f32 to vector<16x64xf32>
    %170 = arith.mulf %169, %168 : vector<16x64xf32>
    %cst_38 = arith.constant 0.707106769 : f32
    %171 = vector.broadcast %cst_38 : f32 to vector<16x64xf32>
    %172 = arith.mulf %168, %171 : vector<16x64xf32>
    %173 = math.erf %172 : vector<16x64xf32>
    %cst_39 = arith.constant 1.000000e+00 : f32
    %174 = vector.broadcast %cst_39 : f32 to vector<16x64xf32>
    %175 = arith.addf %174, %173 : vector<16x64xf32>
    %176 = arith.mulf %170, %175 : vector<16x64xf32>
    %177 = arith.truncf %176 : vector<16x64xf32> to vector<16x64xbf16>
    %c0_40 = arith.constant 0 : index
    %c0_41 = arith.constant 0 : index
    %c0_42 = arith.constant 0 : index
    %178 = vector.load %arg6[%c0_40, %c0_41, %c0_42] : memref<2x64x32xbf16, #tpu.memory_space<vmem>>, vector<1x64x32xbf16>
    %179 = vector.shape_cast %178 : vector<1x64x32xbf16> to vector<64x32xbf16>
    %cst_43 = arith.constant dense<0.000000e+00> : vector<16x32xf32>
    %180 = tpu.matmul %177, %179, %cst_43 {dimension_numbers = #tpu.dot_dimension_numbers<[1], [0], [0], [1], [0, 0, 1, 1], [], []>} : vector<16x64xbf16>, vector<64x32xbf16>, vector<16x32xf32> -> vector<16x32xf32>
    %181 = vector.broadcast %35 : vector<1x32xf32> to vector<16x32xf32>
    %182 = arith.addf %180, %181 : vector<16x32xf32>
    %183 = arith.addf %182, %162 : vector<16x32xf32>
    %cst_44 = arith.constant dense<0.000000e+00> : vector<16xf32>
    %184 = vector.multi_reduction <add>, %183, %cst_44 [1] : vector<16x32xf32> to vector<16xf32>
    %185 = vector.shape_cast %184 : vector<16xf32> to vector<16x1xf32>
    %cst_45 = arith.constant 3.200000e+01 : f32
    %186 = vector.broadcast %cst_45 : f32 to vector<16x1xf32>
    %187 = arith.divf %185, %186 : vector<16x1xf32>
    %188 = arith.mulf %183, %183 : vector<16x32xf32>
    %cst_46 = arith.constant dense<0.000000e+00> : vector<16xf32>
    %189 = vector.multi_reduction <add>, %188, %cst_46 [1] : vector<16x32xf32> to vector<16xf32>
    %190 = vector.shape_cast %189 : vector<16xf32> to vector<16x1xf32>
    %cst_47 = arith.constant 3.200000e+01 : f32
    %191 = vector.broadcast %cst_47 : f32 to vector<16x1xf32>
    %192 = arith.divf %190, %191 : vector<16x1xf32>
    %193 = arith.mulf %187, %187 : vector<16x1xf32>
    %194 = arith.subf %192, %193 : vector<16x1xf32>
    %cst_48 = arith.constant 0.000000e+00 : f32
    %195 = vector.broadcast %cst_48 : f32 to vector<16x1xf32>
    %196 = arith.maximumf %194, %195 : vector<16x1xf32>
    %197 = vector.broadcast %187 : vector<16x1xf32> to vector<16x32xf32>
    %198 = arith.subf %183, %197 : vector<16x32xf32>
    %cst_49 = arith.constant 9.99999996E-13 : f32
    %199 = vector.broadcast %cst_49 : f32 to vector<16x1xf32>
    %200 = arith.addf %196, %199 : vector<16x1xf32>
    %201 = math.rsqrt %200 : vector<16x1xf32>
    %202 = vector.broadcast %201 : vector<16x1xf32> to vector<16x32xf32>
    %203 = arith.mulf %198, %202 : vector<16x32xf32>
    %204 = vector.broadcast %36 : vector<1x32xf32> to vector<16x32xf32>
    %205 = arith.mulf %203, %204 : vector<16x32xf32>
    %206 = vector.broadcast %37 : vector<1x32xf32> to vector<16x32xf32>
    %207 = arith.addf %205, %206 : vector<16x32xf32>
    %c1_50 = arith.constant 1 : index
    %c0_51 = arith.constant 0 : index
    %c0_52 = arith.constant 0 : index
    %208 = vector.load %arg7[%c1_50, %c0_51, %c0_52] : memref<2x8x96xf32, #tpu.memory_space<vmem>>, vector<1x8x96xf32>
    %209 = vector.shape_cast %208 : vector<1x8x96xf32> to vector<8x96xf32>
    %210 = vector.extract_strided_slice %209 {offsets = [0, 0], sizes = [1, 96], strides = [1, 1]} : vector<8x96xf32> to vector<1x96xf32>
    %211 = vector.extract_strided_slice %209 {offsets = [1, 0], sizes = [1, 32], strides = [1, 1]} : vector<8x96xf32> to vector<1x32xf32>
    %212 = vector.extract_strided_slice %209 {offsets = [2, 0], sizes = [1, 32], strides = [1, 1]} : vector<8x96xf32> to vector<1x32xf32>
    %213 = vector.extract_strided_slice %209 {offsets = [3, 0], sizes = [1, 32], strides = [1, 1]} : vector<8x96xf32> to vector<1x32xf32>
    %214 = vector.extract_strided_slice %209 {offsets = [4, 0], sizes = [1, 64], strides = [1, 1]} : vector<8x96xf32> to vector<1x64xf32>
    %215 = vector.extract_strided_slice %209 {offsets = [5, 0], sizes = [1, 32], strides = [1, 1]} : vector<8x96xf32> to vector<1x32xf32>
    %216 = vector.extract_strided_slice %209 {offsets = [6, 0], sizes = [1, 32], strides = [1, 1]} : vector<8x96xf32> to vector<1x32xf32>
    %217 = vector.extract_strided_slice %209 {offsets = [7, 0], sizes = [1, 32], strides = [1, 1]} : vector<8x96xf32> to vector<1x32xf32>
    %218 = arith.truncf %207 : vector<16x32xf32> to vector<16x32xbf16>
    %c1_53 = arith.constant 1 : index
    %c0_54 = arith.constant 0 : index
    %c0_55 = arith.constant 0 : index
    %219 = vector.load %arg3[%c1_53, %c0_54, %c0_55] : memref<2x32x96xbf16, #tpu.memory_space<vmem>>, vector<1x32x96xbf16>
    %220 = vector.shape_cast %219 : vector<1x32x96xbf16> to vector<32x96xbf16>
    %cst_56 = arith.constant dense<0.000000e+00> : vector<16x96xf32>
    %221 = tpu.matmul %218, %220, %cst_56 {dimension_numbers = #tpu.dot_dimension_numbers<[1], [0], [0], [1], [0, 0, 1, 1], [], []>} : vector<16x32xbf16>, vector<32x96xbf16>, vector<16x96xf32> -> vector<16x96xf32>
    %222 = vector.broadcast %210 : vector<1x96xf32> to vector<16x96xf32>
    %223 = arith.addf %221, %222 : vector<16x96xf32>
    %224 = vector.extract_strided_slice %223 {offsets = [0, 0], sizes = [8, 8], strides = [1, 1]} : vector<16x96xf32> to vector<8x8xf32>
    %225 = vector.extract_strided_slice %223 {offsets = [0, 8], sizes = [8, 8], strides = [1, 1]} : vector<16x96xf32> to vector<8x8xf32>
    %226 = vector.extract_strided_slice %223 {offsets = [0, 16], sizes = [8, 8], strides = [1, 1]} : vector<16x96xf32> to vector<8x8xf32>
    %227 = vector.extract_strided_slice %223 {offsets = [0, 24], sizes = [8, 8], strides = [1, 1]} : vector<16x96xf32> to vector<8x8xf32>
    %228 = vector.extract_strided_slice %223 {offsets = [8, 0], sizes = [8, 8], strides = [1, 1]} : vector<16x96xf32> to vector<8x8xf32>
    %229 = vector.extract_strided_slice %223 {offsets = [8, 8], sizes = [8, 8], strides = [1, 1]} : vector<16x96xf32> to vector<8x8xf32>
    %230 = vector.extract_strided_slice %223 {offsets = [8, 16], sizes = [8, 8], strides = [1, 1]} : vector<16x96xf32> to vector<8x8xf32>
    %231 = vector.extract_strided_slice %223 {offsets = [8, 24], sizes = [8, 8], strides = [1, 1]} : vector<16x96xf32> to vector<8x8xf32>
    %232 = vector.shape_cast %224 : vector<8x8xf32> to vector<1x8x8xf32>
    %233 = vector.shape_cast %225 : vector<8x8xf32> to vector<1x8x8xf32>
    %234 = vector.shape_cast %226 : vector<8x8xf32> to vector<1x8x8xf32>
    %235 = vector.shape_cast %227 : vector<8x8xf32> to vector<1x8x8xf32>
    %236 = vector.shape_cast %228 : vector<8x8xf32> to vector<1x8x8xf32>
    %237 = vector.shape_cast %229 : vector<8x8xf32> to vector<1x8x8xf32>
    %238 = vector.shape_cast %230 : vector<8x8xf32> to vector<1x8x8xf32>
    %239 = vector.shape_cast %231 : vector<8x8xf32> to vector<1x8x8xf32>
    %240 = tpu.concatenate %232, %233, %234, %235, %236, %237, %238, %239 in 0 : vector<1x8x8xf32>, vector<1x8x8xf32>, vector<1x8x8xf32>, vector<1x8x8xf32>, vector<1x8x8xf32>, vector<1x8x8xf32>, vector<1x8x8xf32>, vector<1x8x8xf32> -> vector<8x8x8xf32>
    %241 = vector.extract_strided_slice %223 {offsets = [0, 32], sizes = [8, 8], strides = [1, 1]} : vector<16x96xf32> to vector<8x8xf32>
    %242 = vector.extract_strided_slice %223 {offsets = [0, 40], sizes = [8, 8], strides = [1, 1]} : vector<16x96xf32> to vector<8x8xf32>
    %243 = vector.extract_strided_slice %223 {offsets = [0, 48], sizes = [8, 8], strides = [1, 1]} : vector<16x96xf32> to vector<8x8xf32>
    %244 = vector.extract_strided_slice %223 {offsets = [0, 56], sizes = [8, 8], strides = [1, 1]} : vector<16x96xf32> to vector<8x8xf32>
    %245 = vector.extract_strided_slice %223 {offsets = [8, 32], sizes = [8, 8], strides = [1, 1]} : vector<16x96xf32> to vector<8x8xf32>
    %246 = vector.extract_strided_slice %223 {offsets = [8, 40], sizes = [8, 8], strides = [1, 1]} : vector<16x96xf32> to vector<8x8xf32>
    %247 = vector.extract_strided_slice %223 {offsets = [8, 48], sizes = [8, 8], strides = [1, 1]} : vector<16x96xf32> to vector<8x8xf32>
    %248 = vector.extract_strided_slice %223 {offsets = [8, 56], sizes = [8, 8], strides = [1, 1]} : vector<16x96xf32> to vector<8x8xf32>
    %249 = vector.shape_cast %241 : vector<8x8xf32> to vector<1x8x8xf32>
    %250 = vector.shape_cast %242 : vector<8x8xf32> to vector<1x8x8xf32>
    %251 = vector.shape_cast %243 : vector<8x8xf32> to vector<1x8x8xf32>
    %252 = vector.shape_cast %244 : vector<8x8xf32> to vector<1x8x8xf32>
    %253 = vector.shape_cast %245 : vector<8x8xf32> to vector<1x8x8xf32>
    %254 = vector.shape_cast %246 : vector<8x8xf32> to vector<1x8x8xf32>
    %255 = vector.shape_cast %247 : vector<8x8xf32> to vector<1x8x8xf32>
    %256 = vector.shape_cast %248 : vector<8x8xf32> to vector<1x8x8xf32>
    %257 = tpu.concatenate %249, %250, %251, %252, %253, %254, %255, %256 in 0 : vector<1x8x8xf32>, vector<1x8x8xf32>, vector<1x8x8xf32>, vector<1x8x8xf32>, vector<1x8x8xf32>, vector<1x8x8xf32>, vector<1x8x8xf32>, vector<1x8x8xf32> -> vector<8x8x8xf32>
    %258 = vector.extract_strided_slice %223 {offsets = [0, 64], sizes = [8, 8], strides = [1, 1]} : vector<16x96xf32> to vector<8x8xf32>
    %259 = vector.extract_strided_slice %223 {offsets = [0, 72], sizes = [8, 8], strides = [1, 1]} : vector<16x96xf32> to vector<8x8xf32>
    %260 = vector.extract_strided_slice %223 {offsets = [0, 80], sizes = [8, 8], strides = [1, 1]} : vector<16x96xf32> to vector<8x8xf32>
    %261 = vector.extract_strided_slice %223 {offsets = [0, 88], sizes = [8, 8], strides = [1, 1]} : vector<16x96xf32> to vector<8x8xf32>
    %262 = vector.extract_strided_slice %223 {offsets = [8, 64], sizes = [8, 8], strides = [1, 1]} : vector<16x96xf32> to vector<8x8xf32>
    %263 = vector.extract_strided_slice %223 {offsets = [8, 72], sizes = [8, 8], strides = [1, 1]} : vector<16x96xf32> to vector<8x8xf32>
    %264 = vector.extract_strided_slice %223 {offsets = [8, 80], sizes = [8, 8], strides = [1, 1]} : vector<16x96xf32> to vector<8x8xf32>
    %265 = vector.extract_strided_slice %223 {offsets = [8, 88], sizes = [8, 8], strides = [1, 1]} : vector<16x96xf32> to vector<8x8xf32>
    %266 = vector.shape_cast %258 : vector<8x8xf32> to vector<1x8x8xf32>
    %267 = vector.shape_cast %259 : vector<8x8xf32> to vector<1x8x8xf32>
    %268 = vector.shape_cast %260 : vector<8x8xf32> to vector<1x8x8xf32>
    %269 = vector.shape_cast %261 : vector<8x8xf32> to vector<1x8x8xf32>
    %270 = vector.shape_cast %262 : vector<8x8xf32> to vector<1x8x8xf32>
    %271 = vector.shape_cast %263 : vector<8x8xf32> to vector<1x8x8xf32>
    %272 = vector.shape_cast %264 : vector<8x8xf32> to vector<1x8x8xf32>
    %273 = vector.shape_cast %265 : vector<8x8xf32> to vector<1x8x8xf32>
    %274 = tpu.concatenate %266, %267, %268, %269, %270, %271, %272, %273 in 0 : vector<1x8x8xf32>, vector<1x8x8xf32>, vector<1x8x8xf32>, vector<1x8x8xf32>, vector<1x8x8xf32>, vector<1x8x8xf32>, vector<1x8x8xf32>, vector<1x8x8xf32> -> vector<8x8x8xf32>
    %275 = arith.truncf %240 : vector<8x8x8xf32> to vector<8x8x8xbf16>
    %276 = arith.truncf %257 : vector<8x8x8xf32> to vector<8x8x8xbf16>
    "tpu.trace_start"() <{level = 10 : i32, message = "nqd,nkd->nqk"}> : () -> ()
    %cst_57 = arith.constant dense<0.000000e+00> : vector<8x8x8xf32>
    %277 = tpu.matmul %275, %276, %cst_57 {dimension_numbers = #tpu.dot_dimension_numbers<[2], [2], [1], [1], [0, 0, 0, 1, 1, 1], [0], [0]>} : vector<8x8x8xbf16>, vector<8x8x8xbf16>, vector<8x8x8xf32> -> vector<8x8x8xf32>
    "tpu.trace_stop"() : () -> ()
    %278 = vector.broadcast %1 : vector<8x1x8xf32> to vector<8x8x8xf32>
    %279 = arith.addf %277, %278 : vector<8x8x8xf32>
    %cst_58 = arith.constant dense<0xFF800000> : vector<8x8xf32>
    %280 = vector.multi_reduction <maximumf>, %279, %cst_58 [2] : vector<8x8x8xf32> to vector<8x8xf32>
    %281 = vector.shape_cast %280 : vector<8x8xf32> to vector<8x8x1xf32>
    %282 = vector.broadcast %281 : vector<8x8x1xf32> to vector<8x8x8xf32>
    %283 = arith.subf %279, %282 : vector<8x8x8xf32>
    %284 = math.exp %283 : vector<8x8x8xf32>
    %cst_59 = arith.constant dense<0.000000e+00> : vector<8x8xf32>
    %285 = vector.multi_reduction <add>, %284, %cst_59 [2] : vector<8x8x8xf32> to vector<8x8xf32>
    %286 = vector.shape_cast %285 : vector<8x8xf32> to vector<8x8x1xf32>
    %287 = tpu.reciprocal %286 {approx = true} : vector<8x8x1xf32> -> vector<8x8x1xf32>
    %288 = vector.broadcast %287 : vector<8x8x1xf32> to vector<8x8x8xf32>
    %289 = arith.mulf %284, %288 : vector<8x8x8xf32>
    %290 = arith.truncf %289 : vector<8x8x8xf32> to vector<8x8x8xbf16>
    %291 = arith.truncf %274 : vector<8x8x8xf32> to vector<8x8x8xbf16>
    "tpu.trace_start"() <{level = 10 : i32, message = "nqk,nkd->nqd"}> : () -> ()
    %cst_60 = arith.constant dense<0.000000e+00> : vector<8x8x8xf32>
    %292 = tpu.matmul %290, %291, %cst_60 {dimension_numbers = #tpu.dot_dimension_numbers<[2], [1], [1], [2], [0, 0, 0, 1, 1, 2], [0], [0]>} : vector<8x8x8xbf16>, vector<8x8x8xbf16>, vector<8x8x8xf32> -> vector<8x8x8xf32>
    "tpu.trace_stop"() : () -> ()
    %293 = vector.extract_strided_slice %292 {offsets = [0, 0, 0], sizes = [1, 8, 8], strides = [1, 1, 1]} : vector<8x8x8xf32> to vector<1x8x8xf32>
    %294 = vector.shape_cast %293 : vector<1x8x8xf32> to vector<8x8xf32>
    %295 = vector.extract_strided_slice %292 {offsets = [1, 0, 0], sizes = [1, 8, 8], strides = [1, 1, 1]} : vector<8x8x8xf32> to vector<1x8x8xf32>
    %296 = vector.shape_cast %295 : vector<1x8x8xf32> to vector<8x8xf32>
    %297 = vector.extract_strided_slice %292 {offsets = [2, 0, 0], sizes = [1, 8, 8], strides = [1, 1, 1]} : vector<8x8x8xf32> to vector<1x8x8xf32>
    %298 = vector.shape_cast %297 : vector<1x8x8xf32> to vector<8x8xf32>
    %299 = vector.extract_strided_slice %292 {offsets = [3, 0, 0], sizes = [1, 8, 8], strides = [1, 1, 1]} : vector<8x8x8xf32> to vector<1x8x8xf32>
    %300 = vector.shape_cast %299 : vector<1x8x8xf32> to vector<8x8xf32>
    %301 = tpu.concatenate %294, %296, %298, %300 in 1 : vector<8x8xf32>, vector<8x8xf32>, vector<8x8xf32>, vector<8x8xf32> -> vector<8x32xf32>
    %302 = vector.extract_strided_slice %292 {offsets = [4, 0, 0], sizes = [1, 8, 8], strides = [1, 1, 1]} : vector<8x8x8xf32> to vector<1x8x8xf32>
    %303 = vector.shape_cast %302 : vector<1x8x8xf32> to vector<8x8xf32>
    %304 = vector.extract_strided_slice %292 {offsets = [5, 0, 0], sizes = [1, 8, 8], strides = [1, 1, 1]} : vector<8x8x8xf32> to vector<1x8x8xf32>
    %305 = vector.shape_cast %304 : vector<1x8x8xf32> to vector<8x8xf32>
    %306 = vector.extract_strided_slice %292 {offsets = [6, 0, 0], sizes = [1, 8, 8], strides = [1, 1, 1]} : vector<8x8x8xf32> to vector<1x8x8xf32>
    %307 = vector.shape_cast %306 : vector<1x8x8xf32> to vector<8x8xf32>
    %308 = vector.extract_strided_slice %292 {offsets = [7, 0, 0], sizes = [1, 8, 8], strides = [1, 1, 1]} : vector<8x8x8xf32> to vector<1x8x8xf32>
    %309 = vector.shape_cast %308 : vector<1x8x8xf32> to vector<8x8xf32>
    %310 = tpu.concatenate %303, %305, %307, %309 in 1 : vector<8x8xf32>, vector<8x8xf32>, vector<8x8xf32>, vector<8x8xf32> -> vector<8x32xf32>
    %311 = tpu.concatenate %301, %310 in 0 : vector<8x32xf32>, vector<8x32xf32> -> vector<16x32xf32>
    %312 = arith.truncf %311 : vector<16x32xf32> to vector<16x32xbf16>
    %c1_61 = arith.constant 1 : index
    %c0_62 = arith.constant 0 : index
    %c0_63 = arith.constant 0 : index
    %313 = vector.load %arg4[%c1_61, %c0_62, %c0_63] : memref<2x32x32xbf16, #tpu.memory_space<vmem>>, vector<1x32x32xbf16>
    %314 = vector.shape_cast %313 : vector<1x32x32xbf16> to vector<32x32xbf16>
    %cst_64 = arith.constant dense<0.000000e+00> : vector<16x32xf32>
    %315 = tpu.matmul %312, %314, %cst_64 {dimension_numbers = #tpu.dot_dimension_numbers<[1], [0], [0], [1], [0, 0, 1, 1], [], []>} : vector<16x32xbf16>, vector<32x32xbf16>, vector<16x32xf32> -> vector<16x32xf32>
    %316 = vector.broadcast %211 : vector<1x32xf32> to vector<16x32xf32>
    %317 = arith.addf %315, %316 : vector<16x32xf32>
    %318 = arith.addf %317, %207 : vector<16x32xf32>
    %cst_65 = arith.constant dense<0.000000e+00> : vector<16xf32>
    %319 = vector.multi_reduction <add>, %318, %cst_65 [1] : vector<16x32xf32> to vector<16xf32>
    %320 = vector.shape_cast %319 : vector<16xf32> to vector<16x1xf32>
    %cst_66 = arith.constant 3.200000e+01 : f32
    %321 = vector.broadcast %cst_66 : f32 to vector<16x1xf32>
    %322 = arith.divf %320, %321 : vector<16x1xf32>
    %323 = arith.mulf %318, %318 : vector<16x32xf32>
    %cst_67 = arith.constant dense<0.000000e+00> : vector<16xf32>
    %324 = vector.multi_reduction <add>, %323, %cst_67 [1] : vector<16x32xf32> to vector<16xf32>
    %325 = vector.shape_cast %324 : vector<16xf32> to vector<16x1xf32>
    %cst_68 = arith.constant 3.200000e+01 : f32
    %326 = vector.broadcast %cst_68 : f32 to vector<16x1xf32>
    %327 = arith.divf %325, %326 : vector<16x1xf32>
    %328 = arith.mulf %322, %322 : vector<16x1xf32>
    %329 = arith.subf %327, %328 : vector<16x1xf32>
    %cst_69 = arith.constant 0.000000e+00 : f32
    %330 = vector.broadcast %cst_69 : f32 to vector<16x1xf32>
    %331 = arith.maximumf %329, %330 : vector<16x1xf32>
    %332 = vector.broadcast %322 : vector<16x1xf32> to vector<16x32xf32>
    %333 = arith.subf %318, %332 : vector<16x32xf32>
    %cst_70 = arith.constant 9.99999996E-13 : f32
    %334 = vector.broadcast %cst_70 : f32 to vector<16x1xf32>
    %335 = arith.addf %331, %334 : vector<16x1xf32>
    %336 = math.rsqrt %335 : vector<16x1xf32>
    %337 = vector.broadcast %336 : vector<16x1xf32> to vector<16x32xf32>
    %338 = arith.mulf %333, %337 : vector<16x32xf32>
    %339 = vector.broadcast %212 : vector<1x32xf32> to vector<16x32xf32>
    %340 = arith.mulf %338, %339 : vector<16x32xf32>
    %341 = vector.broadcast %213 : vector<1x32xf32> to vector<16x32xf32>
    %342 = arith.addf %340, %341 : vector<16x32xf32>
    %343 = arith.truncf %342 : vector<16x32xf32> to vector<16x32xbf16>
    %c1_71 = arith.constant 1 : index
    %c0_72 = arith.constant 0 : index
    %c0_73 = arith.constant 0 : index
    %344 = vector.load %arg5[%c1_71, %c0_72, %c0_73] : memref<2x32x64xbf16, #tpu.memory_space<vmem>>, vector<1x32x64xbf16>
    %345 = vector.shape_cast %344 : vector<1x32x64xbf16> to vector<32x64xbf16>
    %cst_74 = arith.constant dense<0.000000e+00> : vector<16x64xf32>
    %346 = tpu.matmul %343, %345, %cst_74 {dimension_numbers = #tpu.dot_dimension_numbers<[1], [0], [0], [1], [0, 0, 1, 1], [], []>} : vector<16x32xbf16>, vector<32x64xbf16>, vector<16x64xf32> -> vector<16x64xf32>
    %347 = vector.broadcast %214 : vector<1x64xf32> to vector<16x64xf32>
    %348 = arith.addf %346, %347 : vector<16x64xf32>
    %cst_75 = arith.constant 5.000000e-01 : f32
    %349 = vector.broadcast %cst_75 : f32 to vector<16x64xf32>
    %350 = arith.mulf %349, %348 : vector<16x64xf32>
    %cst_76 = arith.constant 0.707106769 : f32
    %351 = vector.broadcast %cst_76 : f32 to vector<16x64xf32>
    %352 = arith.mulf %348, %351 : vector<16x64xf32>
    %353 = math.erf %352 : vector<16x64xf32>
    %cst_77 = arith.constant 1.000000e+00 : f32
    %354 = vector.broadcast %cst_77 : f32 to vector<16x64xf32>
    %355 = arith.addf %354, %353 : vector<16x64xf32>
    %356 = arith.mulf %350, %355 : vector<16x64xf32>
    %357 = arith.truncf %356 : vector<16x64xf32> to vector<16x64xbf16>
    %c1_78 = arith.constant 1 : index
    %c0_79 = arith.constant 0 : index
    %c0_80 = arith.constant 0 : index
    %358 = vector.load %arg6[%c1_78, %c0_79, %c0_80] : memref<2x64x32xbf16, #tpu.memory_space<vmem>>, vector<1x64x32xbf16>
    %359 = vector.shape_cast %358 : vector<1x64x32xbf16> to vector<64x32xbf16>
    %cst_81 = arith.constant dense<0.000000e+00> : vector<16x32xf32>
    %360 = tpu.matmul %357, %359, %cst_81 {dimension_numbers = #tpu.dot_dimension_numbers<[1], [0], [0], [1], [0, 0, 1, 1], [], []>} : vector<16x64xbf16>, vector<64x32xbf16>, vector<16x32xf32> -> vector<16x32xf32>
    %361 = vector.broadcast %215 : vector<1x32xf32> to vector<16x32xf32>
    %362 = arith.addf %360, %361 : vector<16x32xf32>
    %363 = arith.addf %362, %342 : vector<16x32xf32>
    %cst_82 = arith.constant dense<0.000000e+00> : vector<16xf32>
    %364 = vector.multi_reduction <add>, %363, %cst_82 [1] : vector<16x32xf32> to vector<16xf32>
    %365 = vector.shape_cast %364 : vector<16xf32> to vector<16x1xf32>
    %cst_83 = arith.constant 3.200000e+01 : f32
    %366 = vector.broadcast %cst_83 : f32 to vector<16x1xf32>
    %367 = arith.divf %365, %366 : vector<16x1xf32>
    %368 = arith.mulf %363, %363 : vector<16x32xf32>
    %cst_84 = arith.constant dense<0.000000e+00> : vector<16xf32>
    %369 = vector.multi_reduction <add>, %368, %cst_84 [1] : vector<16x32xf32> to vector<16xf32>
    %370 = vector.shape_cast %369 : vector<16xf32> to vector<16x1xf32>
    %cst_85 = arith.constant 3.200000e+01 : f32
    %371 = vector.broadcast %cst_85 : f32 to vector<16x1xf32>
    %372 = arith.divf %370, %371 : vector<16x1xf32>
    %373 = arith.mulf %367, %367 : vector<16x1xf32>
    %374 = arith.subf %372, %373 : vector<16x1xf32>
    %cst_86 = arith.constant 0.000000e+00 : f32
    %375 = vector.broadcast %cst_86 : f32 to vector<16x1xf32>
    %376 = arith.maximumf %374, %375 : vector<16x1xf32>
    %377 = vector.broadcast %367 : vector<16x1xf32> to vector<16x32xf32>
    %378 = arith.subf %363, %377 : vector<16x32xf32>
    %cst_87 = arith.constant 9.99999996E-13 : f32
    %379 = vector.broadcast %cst_87 : f32 to vector<16x1xf32>
    %380 = arith.addf %376, %379 : vector<16x1xf32>
    %381 = math.rsqrt %380 : vector<16x1xf32>
    %382 = vector.broadcast %381 : vector<16x1xf32> to vector<16x32xf32>
    %383 = arith.mulf %378, %382 : vector<16x32xf32>
    %384 = vector.broadcast %216 : vector<1x32xf32> to vector<16x32xf32>
    %385 = arith.mulf %383, %384 : vector<16x32xf32>
    %386 = vector.broadcast %217 : vector<1x32xf32> to vector<16x32xf32>
    %387 = arith.addf %385, %386 : vector<16x32xf32>
    %388 = vector.extract_strided_slice %387 {offsets = [0, 0], sizes = [1, 32], strides = [1, 1]} : vector<16x32xf32> to vector<1x32xf32>
    %389 = vector.extract_strided_slice %387 {offsets = [8, 0], sizes = [1, 32], strides = [1, 1]} : vector<16x32xf32> to vector<1x32xf32>
    %390 = tpu.concatenate %388, %389 in 0 : vector<1x32xf32>, vector<1x32xf32> -> vector<2x32xf32>
    %c0_88 = arith.constant 0 : index
    %c0_89 = arith.constant 0 : index
    %391 = vector.load %arg8[%c0_88, %c0_89] : memref<2x32xf32, #tpu.memory_space<vmem>>, vector<2x32xf32>
    tpu.vector_store %arg8[%c0_88, %c0_89], %390 {strides = array<i32>} : memref<2x32xf32, #tpu.memory_space<vmem>>, vector<2x32xf32>,
    return
  }
}

</mosaic_0001>

<bundles_post_ra>
// kernel: text_encoder_forward.1
= control target key start
LH: loop header
LB: loop body
LE: loop exit
PB: predicated region body
PF: predicated region fallthrough
CT: control target
= control target key end

     0   :  { %vm43_vm0 = vcmask 261120   ;;  %s4178_s0 = inlined_call_operand.vmem [shape: f32[16,32], index: 0, kind: input, shape index: {}]   ;;  %s4179_s1 = inlined_call_operand.vmem [shape: f32[8,1,8], index: 1, kind: input, shape index: {}]   ;;  %s4180_s2 = inlined_call_operand.vmem [shape: f32[2,32], index: 2, kind: input, shape index: {}]   ;;  %s4181_s3 = inlined_call_operand.vmem [shape: bf16[2,32,96], index: 3, kind: input, shape index: {}]   ;;  %s4182_s4 = inlined_call_operand.vmem [shape: bf16[2,32,32], index: 4, kind: input, shape index: {}]   ;;  %s4183_s5 = inlined_call_operand.vmem [shape: bf16[2,32,64], index: 5, kind: input, shape index: {}]   ;;  %s4184_s6 = inlined_call_operand.vmem [shape: bf16[2,64,32], index: 6, kind: input, shape index: {}]   ;;  %s4185_s7 = inlined_call_operand.vmem [shape: f32[2,8,96], index: 7, kind: input, shape index: {}]   ;;  %s4186_s8 = inlined_call_operand.hbm [shape: f32[2,32], index: 8, kind: output, shape index: {}]  }
   0x1   :  { %v31_v0 = vld [vmem:[%s4178_s0] sm:$0xff]  ;;  %v32_v1 = vld [vmem:[%s4178_s0 + $0x8] sm:$0xff] }
   0x2   :  { %v44_v2 = vsel %vm43_vm0, %v31_v0, 0.0  ;;  %v53_v3 = vmul.f32 %v31_v0, %v31_v0  ;;  %v47_v4 = vsel %vm43_vm0, %v32_v1, 0.0  ;;  %v54_v5 = vmul.f32 %v32_v1, %v32_v1 }
   0x3   :  { %45 = vadd.xlane.f32.xlu0 %v44_v2 }
   0x4   :  { %v55_v6 = vsel %vm43_vm0, %v53_v3, 0.0  ;;  %v58_v7 = vsel %vm43_vm0, %v54_v5, 0.0 }
   0x5   :  { %56 = vadd.xlane.f32.xlu1 %v55_v6 }
   0x7   :  { %48 = vadd.xlane.f32.xlu0 %v47_v4 }
   0x9   :  { %59 = vadd.xlane.f32.xlu1 %v58_v7 }
   0xa   :  { %13 = vsyncpa [#allocation3], 0  ;;  %v3274_v8 = vld [vmem:[%s4181_s3 + $0x8] sm:$0xff]   ;;  %v3417_v9 = vmov 0.0   ;;  %vm3418_vm1 = vmmov 0   ;;  %v3275_v10 = vld [vmem:[%s4181_s3] sm:$0xff]   ;;  %v95_v40 = vlaneseq }
   0xb   :  { %2969 = vmatprep.subr.bf16.mxu1 %v3417_v9  ;;  %2973 = vmatprep.mubr.msk.bf16.mxu1 %vm3418_vm1, %v3417_v9  ;;  %v2786_v30 = vld [vmem:[%s4180_s2] ss:$0 sm:$0xff]  ;;  %v2787_v35 = vld [vmem:[%s4180_s2 + $0x1] ss:$0 sm:$0xff]  ;;  %s3419_s17 = smov 112   ;;  %s3420_s18 = smov 120  }
   0xc   :  { %2970 = vmatpush3.bf16.msra.mxu1 %v3274_v8  ;;  %2983 = vmatprep.subr.bf16.mxu0 %v3417_v9  ;;  %v3512_v41 = vshrl.u32 %v95_v40, 7  ;;  %v3518_v43 = vld [vmem:[%s4185_s7] sm:$0xff]  ;;  %s3421_s19 = smov 104   ;;  %s3422_s20 = smov 96   ;;  %vm234_vm2 = vcmask 64512   ;;  %vm725_vm3 = vcmask 1043456  }
   0xd   :  { %2971 = vmatprep.subr.bf16.mxu1 %v3417_v9  ;;  %2985 = vmatprep.mubr.msk.bf16.mxu0 %vm3418_vm1, %v3417_v9  ;;  %s3423_s12 = smov 64   ;;  %s3424_s2 = smov 8   ;;  %vm1118_vm4 = vcmask 130048   ;;  %vm1120_vm5 = vcmask 195584   ;;  %vm1360_vm6 = vcmask 523264   ;;  %vm2768_vm7 = vcmask 1040384  }
   0xe   :  { %v97_v42 = vsub.s32 0, %v3512_v41  ;;  %s3425_s21 = smov 16   ;;  %s3426_s24 = smov 24   ;;  %vm2770_vm8 = vcmask 254976  }
  0x10   :  { %2972 = vmatpush3.bf16.msra.mxu1 %v3275_v10  ;;  %v98_v44 = vrot.slane %v3518_v43, %v97_v42 }
  0x11   :  { %2977 = vmatprep.subr.bf16.mxu1 %v3417_v9 }
  0x8c   :  { %v46_v11 = vpop.xlane.xlu0 %45 }
  0x8d   :  { %v51_v12 = vmul.f32 0.03125, %v46_v11 }
  0x8e   :  { %v57_v13 = vpop.xlane.xlu1 %56 }
  0x8f   :  { %v63_v14 = vmul.f32 %v51_v12, %v51_v12  ;;  %v61_v15 = vmul.f32 0.03125, %v57_v13  ;;  %v69_v27 = vsub.f32 %v31_v0, %v51_v12 }
  0x90   :  { %v49_v16 = vpop.xlane.xlu0 %48 }
  0x91   :  { %v65_v17 = vsub.f32 %v61_v15, %v63_v14  ;;  %v52_v18 = vmul.f32 0.03125, %v49_v16 }
  0x92   :  { %v60_v19 = vpop.xlane.xlu1 %59 }
  0x93   :  { %v67_v20 = vmax.f32 %v65_v17, 0.0  ;;  %v64_v21 = vmul.f32 %v52_v18, %v52_v18  ;;  %v62_v22 = vmul.f32 0.03125, %v60_v19  ;;  %v70_v31 = vsub.f32 %v32_v1, %v52_v18  ;;  %v2791_v18 = vld [vmem:[%s4179_s1] ss:$0 sm:$0xff] }
  0x95   :  { %v71_v23 = vadd.f32 1e-12, %v67_v20  ;;  %v66_v24 = vsub.f32 %v62_v22, %v64_v21 }
  0x97   :  { %3294 = vrsqrt.f32 %v71_v23  ;;  %v68_v25 = vmax.f32 %v66_v24, 0.0 }
  0x99   :  { %v72_v26 = vadd.f32 1e-12, %v68_v25  ;;  %v2792_v25 = vld [vmem:[%s4179_s1 + $0x1] ss:$0 sm:$0xff] }
  0x9b   :  { %3296 = vrsqrt.f32 %v72_v26  ;;  %v2793_v26 = vld [vmem:[%s4179_s1 + $0x2] ss:$0 sm:$0xff] }
  0xa4   :  { %v3295_v28 = vpop.eup %3294 }
  0xa5   :  { %v75_v29 = vmul.f32 %v3295_v28, %v69_v27 }
  0xa7   :  { %v81_v34 = vmul.f32 %v2786_v30, %v75_v29 }
  0xa8   :  { %v3297_v32 = vpop.eup %3296 }
  0xa9   :  { %v76_v33 = vmul.f32 %v3297_v32, %v70_v31  ;;  %v3503_v37 = vadd.f32 %v2787_v35, %v81_v34 }
  0xab   :  { %v82_v36 = vmul.f32 %v2786_v30, %v76_v33 }
  0xad   :  { %v3505_v38 = vadd.f32 %v2787_v35, %v82_v36 }
  0xaf   :  { %v90_v39 = vpack.c.bf16 %v3505_v38, %v3503_v37 }
  0xb1   :  { %2974 = vmatmul.mubr.msk.bf16.vlgmr.msra.gmra.mxu1 %vm43_vm0, %v90_v39 }
  0xb2   :  { %2979 = vmatprep.mubr.msk.bf16.mxu1 %vm3418_vm1, %v3417_v9 }
 0x171   :  { %v148_v45 = vpop.f32.mrf.mxu1 }
 0x172   :  { %v149_v46 = vadd.f32 %v148_v45, %v98_v44 }
 0x173   :  { %v2975_v47 = vpop.f32.mrf.mxu1 }
 0x174   :  { %159 = vrot.lane.b32.xlu1 %v149_v46, %s3419_s17  ;;  %156 = vrot.lane.b32.xlu0 %v149_v46, %s3420_s18  ;;  %v3527_v51 = vpack.c.bf16 %v149_v46, %v149_v46 }
 0x175   :  { %v151_v48 = vpop.f32.mrf.mxu1 }
 0x176   :  { %v152_v49 = vadd.f32 %v151_v48, %v98_v44  ;;  %v2794_v44 = vld [vmem:[%s4179_s1 + $0x3] ss:$0 sm:$0xff] }
 0x177   :  { %v2976_v50 = vpop.f32.mrf.mxu1 }
 0x178   :  { %162 = vrot.lane.b32.xlu1 %v149_v46, %s3421_s19  ;;  %169 = vrot.lane.b32.xlu0 %v152_v49, %s3419_s17  ;;  %v3543_v59 = vpack.c.bf16 %v152_v49, %v152_v49  ;;  %v2795_v46 = vld [vmem:[%s4179_s1 + $0x4] ss:$0 sm:$0xff] }
 0x17c   :  { %232 = vrot.lane.b32.xlu0 %v3527_v51, %s3422_s20  ;;  %166 = vrot.lane.b32.xlu1 %v152_v49, %s3420_s18 }
 0x180   :  { %172 = vrot.lane.b32.xlu1 %v152_v49, %s3421_s19 }
 0x1e6   :  { %v160_v52 = vpop.permute.xlu1 %159  ;;  %v157_v53 = vpop.permute.xlu0 %156 }
 0x1e7   :  { %v3533_v54 = vpack.c.bf16 %v160_v52, %v160_v52  ;;  %v3535_v55 = vpack.c.bf16 %v157_v53, %v157_v53 }
 0x1e9   :  { %331 = vrot.lane.b32.xlu0 %v3533_v54, %s3422_s20  ;;  %282 = vrot.lane.b32.xlu1 %v3535_v55, %s3422_s20 }
 0x1ea   :  { %v163_v56 = vpop.permute.xlu1 %162  ;;  %v170_v57 = vpop.permute.xlu0 %169 }
 0x1eb   :  { %v3541_v58 = vpack.c.bf16 %v163_v56, %v163_v56  ;;  %v3549_v62 = vpack.c.bf16 %v170_v57, %v170_v57 }
 0x1ed   :  { %380 = vrot.lane.b32.xlu1 %v3541_v58, %s3422_s20  ;;  %429 = vrot.lane.b32.xlu0 %v3543_v59, %s3422_s20 }
 0x1ee   :  { %v233_v60 = vpop.permute.xlu0 %232  ;;  %v167_v61 = vpop.permute.xlu1 %166 }
 0x1ef   :  { %v239_v63 = vsel %vm234_vm2, %v233_v60, 0  ;;  %v3552_v0 = vpack.c.bf16 %v167_v61, %v167_v61 }
 0x1f0   :  { %2978 = vmatpush3.bf16.xpose.msra.mxu1 %v239_v63  ;;  %v2796_v63 = vld [vmem:[%s4179_s1 + $0x5] ss:$0 sm:$0xff] }
 0x1f1   :  { %478 = vrot.lane.b32.xlu1 %v3552_v0, %s3422_s20  ;;  %527 = vrot.lane.b32.xlu0 %v3549_v62, %s3422_s20 }
 0x1f2   :  { %v173_v1 = vpop.permute.xlu1 %172  ;;  %2989 = vmatprep.subr.bf16.mxu1 %v3417_v9 }
 0x1f3   :  { %v3559_v2 = vpack.c.bf16 %v173_v1, %v173_v1  ;;  %v2797_v1 = vld [vmem:[%s4179_s1 + $0x6] ss:$0 sm:$0xff] }
 0x1f5   :  { %576 = vrot.lane.b32.xlu1 %v3559_v2, %s3422_s20 }
 0x1f7   :  { %2980 = vmatmul.mubr.msk.bf16.vlgmr.msra.gmra.mxu1 %vm234_vm2, %v3527_v51 }
 0x1f8   :  { %2991 = vmatprep.mubr.msk.bf16.mxu1 %vm3418_vm1, %v3417_v9 }
 0x25b   :  { %v332_v3 = vpop.permute.xlu0 %331  ;;  %v283_v4 = vpop.permute.xlu1 %282 }
 0x25c   :  { %v337_v5 = vsel %vm234_vm2, %v332_v3, 0  ;;  %v288_v6 = vsel %vm234_vm2, %v283_v4, 0 }
 0x25d   :  { %2984 = vmatpush3.bf16.xpose.msra.mxu0 %v288_v6  ;;  %2990 = vmatpush3.bf16.xpose.msra.mxu1 %v337_v5 }
 0x25e   :  { %2995 = vmatprep.subr.bf16.mxu0 %v3417_v9  ;;  %3001 = vmatprep.subr.bf16.mxu1 %v3417_v9 }
 0x25f   :  { %v381_v7 = vpop.permute.xlu1 %380  ;;  %v430_v8 = vpop.permute.xlu0 %429 }
 0x260   :  { %v386_v10 = vsel %vm234_vm2, %v381_v7, 0  ;;  %v435_v11 = vsel %vm234_vm2, %v430_v8, 0 }
 0x263   :  { %v479_v12 = vpop.permute.xlu1 %478  ;;  %v528_v13 = vpop.permute.xlu0 %527 }
 0x264   :  { %2986 = vmatmul.mubr.msk.bf16.vlgmr.msra.gmra.mxu0 %vm234_vm2, %v3535_v55  ;;  %2992 = vmatmul.mubr.msk.bf16.vlgmr.msra.gmra.mxu1 %vm234_vm2, %v3533_v54  ;;  %v484_v14 = vsel %vm234_vm2, %v479_v12, 0  ;;  %v533_v15 = vsel %vm234_vm2, %v528_v13, 0 }
 0x265   :  { %2996 = vmatpush3.bf16.xpose.msra.mxu0 %v386_v10  ;;  %3002 = vmatpush3.bf16.xpose.msra.mxu1 %v435_v11 }
 0x266   :  { %2997 = vmatprep.mubr.msk.bf16.mxu0 %vm3418_vm1, %v3417_v9  ;;  %3003 = vmatprep.mubr.msk.bf16.mxu1 %vm3418_vm1, %v3417_v9 }
 0x267   :  { %3007 = vmatprep.subr.bf16.mxu0 %v3417_v9  ;;  %3013 = vmatprep.subr.bf16.mxu1 %v3417_v9  ;;  %v577_v16 = vpop.permute.xlu1 %576 }
 0x268   :  { %v582_v17 = vsel %vm234_vm2, %v577_v16, 0 }
 0x26c   :  { %2998 = vmatmul.mubr.msk.bf16.vlgmr.msra.gmra.mxu0 %vm234_vm2, %v3541_v58  ;;  %3004 = vmatmul.mubr.msk.bf16.vlgmr.msra.gmra.mxu1 %vm234_vm2, %v3543_v59 }
 0x26d   :  { %3008 = vmatpush3.bf16.xpose.msra.mxu0 %v484_v14  ;;  %3014 = vmatpush3.bf16.xpose.msra.mxu1 %v533_v15 }
 0x26e   :  { %3009 = vmatprep.mubr.msk.bf16.mxu0 %vm3418_vm1, %v3417_v9  ;;  %3015 = vmatprep.mubr.msk.bf16.mxu1 %vm3418_vm1, %v3417_v9 }
 0x26f   :  { %3019 = vmatprep.subr.bf16.mxu0 %v3417_v9  ;;  %3025 = vmatprep.subr.bf16.mxu1 %v3417_v9 }
 0x274   :  { %3010 = vmatmul.mubr.msk.bf16.vlgmr.msra.gmra.mxu0 %vm234_vm2, %v3552_v0  ;;  %3016 = vmatmul.mubr.msk.bf16.vlgmr.msra.gmra.mxu1 %vm234_vm2, %v3549_v62 }
 0x275   :  { %3020 = vmatpush3.bf16.xpose.msra.mxu0 %v582_v17  ;;  %3021 = vmatprep.mubr.msk.bf16.mxu0 %vm3418_vm1, %v3417_v9 }
 0x276   :  { %3031 = vmatprep.subr.bf16.mxu0 %v3417_v9  ;;  %3027 = vmatprep.mubr.msk.bf16.mxu1 %vm3418_vm1, %v3417_v9 }
 0x27c   :  { %3022 = vmatmul.mubr.msk.bf16.vlgmr.msra.gmra.mxu0 %vm234_vm2, %v3559_v2 }
 0x27d   :  { %3033 = vmatprep.mubr.msk.bf16.mxu0 %vm3418_vm1, %v3417_v9 }
 0x2b7   :  { %v275_v19 = vpop.f32.mrf.mxu1 }
 0x2b8   :  { %v3612_v20 = vadd.f32 %v2791_v18, %v275_v19 }
 0x2b9   :  { %v2981_v21 = vpop.f32.mrf.mxu1 }
 0x2ba   :  { %v624_v22 = vsel %vm234_vm2, %v3612_v20, -inf }
 0x2bb   :  { %625 = vmax.xlane.f32.xlu0 %v624_v22  ;;  %v278_v23 = vpop.f32.mrf.mxu1 }
 0x2bd   :  { %v2982_v24 = vpop.f32.mrf.mxu1 }
 0x324   :  { %v324_v27 = vpop.f32.mrf.mxu0  ;;  %v373_v28 = vpop.f32.mrf.mxu1 }
 0x325   :  { %v3622_v29 = vadd.f32 %v2792_v25, %v324_v27  ;;  %v3624_v30 = vadd.f32 %v2793_v26, %v373_v28  ;;  %v2798_v26 = vld [vmem:[%s4179_s1 + $0x7] ss:$0 sm:$0xff] }
 0x326   :  { %v2987_v31 = vpop.f32.mrf.mxu0  ;;  %v2993_v32 = vpop.f32.mrf.mxu1 }
 0x327   :  { %v627_v33 = vsel %vm234_vm2, %v3622_v29, -inf  ;;  %v630_v34 = vsel %vm234_vm2, %v3624_v30, -inf }
 0x328   :  { %628 = vmax.xlane.f32.xlu1 %v627_v33  ;;  %v327_v35 = vpop.f32.mrf.mxu0  ;;  %631 = vmax.xlane.f32.xlu0 %v630_v34  ;;  %v376_v36 = vpop.f32.mrf.mxu1 }
 0x32a   :  { %v2988_v39 = vpop.f32.mrf.mxu0  ;;  %v2994_v40 = vpop.f32.mrf.mxu1 }
 0x32c   :  { %v422_v45 = vpop.f32.mrf.mxu0  ;;  %v471_v47 = vpop.f32.mrf.mxu1 }
 0x32d   :  { %v3636_v48 = vadd.f32 %v2794_v44, %v422_v45  ;;  %v3638_v52 = vadd.f32 %v2795_v46, %v471_v47 }
 0x32e   :  { %v2999_v49 = vpop.f32.mrf.mxu0  ;;  %v3005_v50 = vpop.f32.mrf.mxu1 }
 0x32f   :  { %v633_v53 = vsel %vm234_vm2, %v3636_v48, -inf  ;;  %v636_v3 = vsel %vm234_vm2, %v3638_v52, -inf }
 0x330   :  { %v425_v56 = vpop.f32.mrf.mxu0  ;;  %634 = vmax.xlane.f32.xlu0 %v633_v53  ;;  %v474_v57 = vpop.f32.mrf.mxu1 }
 0x332   :  { %v3000_v60 = vpop.f32.mrf.mxu0  ;;  %v3006_v61 = vpop.f32.mrf.mxu1 }
 0x334   :  { %v520_v4 = vpop.f32.mrf.mxu0  ;;  %637 = vmax.xlane.f32.xlu0 %v636_v3  ;;  %v569_v5 = vpop.f32.mrf.mxu1 }
 0x335   :  { %v3650_v6 = vadd.f32 %v2796_v63, %v520_v4  ;;  %v3652_v7 = vadd.f32 %v2797_v1, %v569_v5 }
 0x336   :  { %v3011_v8 = vpop.f32.mrf.mxu0  ;;  %v3017_v10 = vpop.f32.mrf.mxu1 }
 0x337   :  { %v639_v11 = vsel %vm234_vm2, %v3650_v6, -inf  ;;  %v642_v12 = vsel %vm234_vm2, %v3652_v7, -inf }
 0x338   :  { %640 = vmax.xlane.f32.xlu1 %v639_v11  ;;  %v523_v13 = vpop.f32.mrf.mxu0  ;;  %643 = vmax.xlane.f32.xlu0 %v642_v12  ;;  %v572_v14 = vpop.f32.mrf.mxu1 }
 0x33a   :  { %v3012_v15 = vpop.f32.mrf.mxu0  ;;  %v3018_v16 = vpop.f32.mrf.mxu1 }
 0x33c   :  { %v618_v17 = vpop.f32.mrf.mxu0 }
 0x33d   :  { %v619_v27 = vadd.f32 %v2798_v26, %v618_v17 }
 0x33e   :  { %v3023_v18 = vpop.f32.mrf.mxu0 }
 0x340   :  { %v621_v19 = vpop.f32.mrf.mxu0 }
 0x342   :  { %v3024_v21 = vpop.f32.mrf.mxu0 }
 0x344   :  { %v626_v22 = vpop.xlane.xlu0 %625 }
 0x345   :  { %v648_v23 = vsub.f32 %v3612_v20, %v626_v22 }
 0x347   :  { %v656_v24 = vmul.f32 1.442695, %v648_v23 }
 0x349   :  { %769 = vrot.lane.b32.xlu1 %v3535_v55, %s3423_s12  ;;  %3298 = vpow2.f32 %v656_v24 }
 0x34d   :  { %817 = vrot.lane.b32.xlu1 %v3533_v54, %s3423_s12  ;;  %v645_v54 = vsel %vm234_vm2, %v619_v27, -inf }
 0x34e   :  { %720 = vrot.lane.b32.xlu0 %v3527_v51, %s3423_s12 }
 0x356   :  { %v3665_v25 = vpop.eup %3298 }
 0x357   :  { %v672_v55 = vsel %vm234_vm2, %v3665_v25, 0.0 }
 0x36d   :  { %673 = vadd.xlane.f32.xlu0 %v672_v55 }
 0x371   :  { %646 = vmax.xlane.f32.xlu1 %v645_v54 }
 0x382   :  { %865 = vrot.lane.b32.xlu1 %v3541_v58, %s3423_s12 }
 0x3b1   :  { %v629_v51 = vpop.xlane.xlu1 %628  ;;  %v632_v20 = vpop.xlane.xlu0 %631 }
 0x3b2   :  { %v649_v28 = vsub.f32 %v3622_v29, %v629_v51  ;;  %v650_v31 = vsub.f32 %v3624_v30, %v632_v20 }
 0x3b4   :  { %v658_v32 = vmul.f32 1.442695, %v649_v28  ;;  %v660_v33 = vmul.f32 1.442695, %v650_v31 }
 0x3b6   :  { %3300 = vpow2.f32 %v658_v32 }
 0x3b7   :  { %3302 = vpow2.f32 %v660_v33 }
 0x3b9   :  { %v635_v34 = vpop.xlane.xlu0 %634 }
 0x3ba   :  { %v651_v49 = vsub.f32 %v3636_v48, %v635_v34 }
 0x3bc   :  { %v662_v53 = vmul.f32 1.442695, %v651_v49 }
 0x3bd   :  { %v638_v35 = vpop.xlane.xlu0 %637 }
 0x3be   :  { %v652_v50 = vsub.f32 %v3638_v52, %v638_v35  ;;  %3304 = vpow2.f32 %v662_v53 }
 0x3c0   :  { %v664_v57 = vmul.f32 1.442695, %v652_v50 }
 0x3c1   :  { %v641_v36 = vpop.xlane.xlu1 %640  ;;  %v644_v39 = vpop.xlane.xlu0 %643 }
 0x3c2   :  { %v653_v56 = vsub.f32 %v3650_v6, %v641_v36  ;;  %v654_v60 = vsub.f32 %v3652_v7, %v644_v39  ;;  %3306 = vpow2.f32 %v664_v57 }
 0x3c3   :  { %v3677_v40 = vpop.eup %3300 }
 0x3c4   :  { %v3679_v44 = vpop.eup %3302  ;;  %v675_v58 = vsel %vm234_vm2, %v3677_v40, 0.0  ;;  %v666_v61 = vmul.f32 1.442695, %v653_v56  ;;  %v668_v63 = vmul.f32 1.442695, %v654_v60 }
 0x3c5   :  { %676 = vadd.xlane.f32.xlu1 %v675_v58  ;;  %v770_v29 = vpop.permute.xlu1 %769  ;;  %v678_v30 = vsel %vm234_vm2, %v3679_v44, 0.0  ;;  %v721_v45 = vpop.permute.xlu0 %720 }
 0x3c6   :  { %v775_v46 = vsel %vm725_vm3, %v770_v29, 0  ;;  %679 = vadd.xlane.f32.xlu0 %v678_v30  ;;  %v727_v47 = vsel %vm725_vm3, %v721_v45, 0  ;;  %3308 = vpow2.f32 %v666_v61 }
 0x3c7   :  { %3026 = vmatpush3.bf16.msra.mxu1 %v727_v47  ;;  %3032 = vmatpush3.bf16.msra.mxu0 %v775_v46  ;;  %3310 = vpow2.f32 %v668_v63 }
 0x3c8   :  { %3037 = vmatprep.subr.bf16.mxu1 %v3417_v9  ;;  %3043 = vmatprep.subr.bf16.mxu0 %v3417_v9 }
 0x3c9   :  { %v818_v1 = vpop.permute.xlu1 %817 }
 0x3ca   :  { %v823_v15 = vsel %vm725_vm3, %v818_v1, 0 }
 0x3d6   :  { %961 = vrot.lane.b32.xlu1 %v3552_v0, %s3423_s12  ;;  %v3697_v0 = vpop.eup %3304 }
 0x3d7   :  { %v3699_v3 = vpop.eup %3306  ;;  %v681_v48 = vsel %vm234_vm2, %v3697_v0, 0.0 }
 0x3d8   :  { %v3703_v52 = vpop.eup %3308  ;;  %v684_v5 = vsel %vm234_vm2, %v3699_v3, 0.0 }
 0x3d9   :  { %v3707_v6 = vpop.eup %3310  ;;  %v687_v10 = vsel %vm234_vm2, %v3703_v52, 0.0 }
 0x3da   :  { %v690_v11 = vsel %vm234_vm2, %v3707_v6, 0.0 }
 0x3dc   :  { %913 = vrot.lane.b32.xlu0 %v3543_v59, %s3423_s12 }
 0x3f6   :  { %v674_v59 = vpop.xlane.xlu0 %673 }
 0x3f7   :  { %3312 = vrcp.f32 %v674_v59 }
 0x3fa   :  { %v647_v4 = vpop.xlane.xlu1 %646  ;;  %682 = vadd.xlane.f32.xlu1 %v681_v48 }
 0x3fb   :  { %v655_v7 = vsub.f32 %v619_v27, %v647_v4  ;;  %685 = vadd.xlane.f32.xlu0 %v684_v5 }
 0x3fd   :  { %v670_v8 = vmul.f32 1.442695, %v655_v7 }
 0x3fe   :  { %688 = vadd.xlane.f32.xlu1 %v687_v10  ;;  %v866_v18 = vpop.permute.xlu1 %865 }
 0x3ff   :  { %3314 = vpow2.f32 %v670_v8  ;;  %691 = vadd.xlane.f32.xlu0 %v690_v11  ;;  %v871_v54 = vsel %vm725_vm3, %v866_v18, 0 }
 0x404   :  { %v3313_v12 = vpop.eup %3312 }
 0x405   :  { %v704_v13 = vmul.f32 %v3313_v12, %v3665_v25  ;;  %v3276_v12 = vld [vmem:[%s4182_s4 + $0x8] sm:$0xff]  }
 0x407   :  { %v712_v14 = vpack.c.bf16 %v704_v13, %v704_v13 }
 0x409   :  { %3028 = vmatmul.mubr.msk.bf16.vlgmr.msra.gmra.mxu1 %vm234_vm2, %v712_v14 }
 0x40a   :  { %3038 = vmatpush3.bf16.msra.mxu1 %v823_v15  ;;  %3039 = vmatprep.mubr.msk.bf16.mxu1 %vm3418_vm1, %v3417_v9 }
 0x40b   :  { %3049 = vmatprep.subr.bf16.mxu1 %v3417_v9 }
 0x40c   :  { %v3719_v16 = vpop.eup %3314 }
 0x40d   :  { %v693_v17 = vsel %vm234_vm2, %v3719_v16, 0.0 }
 0x40e   :  { %694 = vadd.xlane.f32.xlu1 %v693_v17 }
 0x415   :  { %1009 = vrot.lane.b32.xlu0 %v3549_v62, %s3423_s12 }
 0x41f   :  { %1057 = vrot.lane.b32.xlu1 %v3559_v2, %s3423_s12 }
 0x44e   :  { %v677_v19 = vpop.xlane.xlu1 %676 }
 0x44f   :  { %3316 = vrcp.f32 %v677_v19  ;;  %v680_v21 = vpop.xlane.xlu0 %679 }
 0x450   :  { %3318 = vrcp.f32 %v680_v21 }
 0x452   :  { %v962_v2 = vpop.permute.xlu1 %961 }
 0x453   :  { %v914_v26 = vpop.permute.xlu0 %913  ;;  %v967_v29 = vsel %vm725_vm3, %v962_v2, 0 }
 0x454   :  { %v919_v62 = vsel %vm725_vm3, %v914_v26, 0 }
 0x45c   :  { %v3317_v22 = vpop.eup %3316 }
 0x45d   :  { %v3319_v23 = vpop.eup %3318  ;;  %v705_v24 = vmul.f32 %v3317_v22, %v3677_v40 }
 0x45e   :  { %v706_v25 = vmul.f32 %v3319_v23, %v3679_v44 }
 0x45f   :  { %v713_v27 = vpack.c.bf16 %v705_v24, %v705_v24 }
 0x460   :  { %v714_v55 = vpack.c.bf16 %v706_v25, %v706_v25 }
 0x461   :  { %3034 = vmatmul.mubr.msk.bf16.vlgmr.msra.gmra.mxu0 %vm234_vm2, %v713_v27  ;;  %v3277_v27 = vld [vmem:[%s4182_s4] sm:$0xff]  }
 0x462   :  { %3040 = vmatmul.mubr.msk.bf16.vlgmr.msra.gmra.mxu1 %vm234_vm2, %v714_v55  ;;  %3044 = vmatpush3.bf16.msra.mxu0 %v871_v54 }
 0x463   :  { %3050 = vmatpush3.bf16.msra.mxu1 %v919_v62  ;;  %3045 = vmatprep.mubr.msk.bf16.mxu0 %vm3418_vm1, %v3417_v9 }
 0x464   :  { %3051 = vmatprep.mubr.msk.bf16.mxu1 %vm3418_vm1, %v3417_v9  ;;  %3055 = vmatprep.subr.bf16.mxu0 %v3417_v9 }
 0x465   :  { %3061 = vmatprep.subr.bf16.mxu1 %v3417_v9 }
 0x483   :  { %v683_v51 = vpop.xlane.xlu1 %682 }
 0x484   :  { %3320 = vrcp.f32 %v683_v51  ;;  %v686_v20 = vpop.xlane.xlu0 %685 }
 0x485   :  { %3322 = vrcp.f32 %v686_v20 }
 0x487   :  { %v689_v28 = vpop.xlane.xlu1 %688 }
 0x488   :  { %3324 = vrcp.f32 %v689_v28  ;;  %v692_v31 = vpop.xlane.xlu0 %691 }
 0x489   :  { %3326 = vrcp.f32 %v692_v31 }
 0x48c   :  { %v1010_v36 = vpop.permute.xlu0 %1009 }
 0x48d   :  { %v1015_v30 = vsel %vm725_vm3, %v1010_v36, 0 }
 0x491   :  { %v3321_v32 = vpop.eup %3320 }
 0x492   :  { %v3323_v33 = vpop.eup %3322  ;;  %v707_v34 = vmul.f32 %v3321_v32, %v3697_v0 }
 0x493   :  { %v708_v35 = vmul.f32 %v3323_v33, %v3699_v3 }
 0x494   :  { %v715_v39 = vpack.c.bf16 %v707_v34, %v707_v34 }
 0x495   :  { %v3325_v40 = vpop.eup %3324  ;;  %v716_v44 = vpack.c.bf16 %v708_v35, %v708_v35 }
 0x496   :  { %v3327_v58 = vpop.eup %3326  ;;  %3046 = vmatmul.mubr.msk.bf16.vlgmr.msra.gmra.mxu0 %vm234_vm2, %v715_v39  ;;  %v709_v46 = vmul.f32 %v3325_v40, %v3703_v52 }
 0x497   :  { %3052 = vmatmul.mubr.msk.bf16.vlgmr.msra.gmra.mxu1 %vm234_vm2, %v716_v44  ;;  %3056 = vmatpush3.bf16.msra.mxu0 %v967_v29  ;;  %v695_v45 = vpop.xlane.xlu1 %694  ;;  %v710_v47 = vmul.f32 %v3327_v58, %v3707_v6 }
 0x498   :  { %3062 = vmatpush3.bf16.msra.mxu1 %v1015_v30  ;;  %3328 = vrcp.f32 %v695_v45  ;;  %3057 = vmatprep.mubr.msk.bf16.mxu0 %vm3418_vm1, %v3417_v9  ;;  %v717_v53 = vpack.c.bf16 %v709_v46, %v709_v46 }
 0x499   :  { %3063 = vmatprep.mubr.msk.bf16.mxu1 %vm3418_vm1, %v3417_v9  ;;  %3067 = vmatprep.subr.bf16.mxu0 %v3417_v9  ;;  %v718_v56 = vpack.c.bf16 %v710_v47, %v710_v47 }
 0x49a   :  { %3073 = vmatprep.subr.bf16.mxu1 %v3417_v9 }
 0x49b   :  { %v1058_v49 = vpop.permute.xlu1 %1057 }
 0x49c   :  { %v1063_v50 = vsel %vm725_vm3, %v1058_v49, 0 }
 0x49e   :  { %3058 = vmatmul.mubr.msk.bf16.vlgmr.msra.gmra.mxu0 %vm234_vm2, %v717_v53  ;;  %v1144_v53 = vsub.s32 1, %v3512_v41 }
 0x49f   :  { %3064 = vmatmul.mubr.msk.bf16.vlgmr.msra.gmra.mxu1 %vm234_vm2, %v718_v56  ;;  %3068 = vmatpush3.bf16.msra.mxu0 %v1063_v50 }
 0x4a0   :  { %3069 = vmatprep.mubr.msk.bf16.mxu0 %vm3418_vm1, %v3417_v9  ;;  %3077 = vmatprep.mubr.msk.bf16.mxu1 %vm3418_vm1, %v3417_v9  ;;  %v1145_v56 = vrot.slane %v3518_v43, %v1144_v53 }
 0x4a1   :  { %3081 = vmatprep.subr.bf16.mxu0 %v3417_v9  ;;  %3074 = vmatpush3.bf16.msra.mxu1 %v3276_v12 }
 0x4a2   :  { %3075 = vmatprep.subr.bf16.mxu1 %v3417_v9 }
 0x4a5   :  { %v3329_v57 = vpop.eup %3328  ;;  %3076 = vmatpush3.bf16.msra.mxu1 %v3277_v27 }
 0x4a6   :  { %v711_v60 = vmul.f32 %v3329_v57, %v3719_v16  ;;  %3089 = vmatprep.subr.bf16.mxu1 %v3417_v9 }
 0x4a8   :  { %v719_v61 = vpack.c.bf16 %v711_v60, %v711_v60 }
 0x4aa   :  { %3070 = vmatmul.mubr.msk.bf16.vlgmr.msra.gmra.mxu0 %vm234_vm2, %v719_v61 }
 0x4ab   :  { %3085 = vmatprep.mubr.msk.bf16.mxu0 %vm3418_vm1, %v3417_v9 }
 0x4c9   :  { %v763_v63 = vpop.f32.mrf.mxu1 }
 0x4cb   :  { %v3029_v0 = vpop.f32.mrf.mxu1 }
 0x4cd   :  { %v766_v1 = vpop.f32.mrf.mxu1 }
 0x4cf   :  { %v3030_v59 = vpop.f32.mrf.mxu1 }
 0x521   :  { %v811_v3 = vpop.f32.mrf.mxu0 }
 0x522   :  { %v859_v48 = vpop.f32.mrf.mxu1 }
 0x523   :  { %v3035_v52 = vpop.f32.mrf.mxu0 }
 0x524   :  { %v3041_v4 = vpop.f32.mrf.mxu1 }
 0x525   :  { %v814_v5 = vpop.f32.mrf.mxu0 }
 0x526   :  { %v862_v6 = vpop.f32.mrf.mxu1 }
 0x527   :  { %v3036_v7 = vpop.f32.mrf.mxu0 }
 0x528   :  { %v3042_v8 = vpop.f32.mrf.mxu1 }
 0x529   :  { %v3279_v8 = vld [vmem:[%s4183_s5] sm:$0xff]  }
 0x556   :  { %v907_v10 = vpop.f32.mrf.mxu0 }
 0x557   :  { %v955_v11 = vpop.f32.mrf.mxu1 }
 0x558   :  { %v3047_v13 = vpop.f32.mrf.mxu0 }
 0x559   :  { %v3053_v14 = vpop.f32.mrf.mxu1 }
 0x55a   :  { %v910_v15 = vpop.f32.mrf.mxu0 }
 0x55b   :  { %v958_v16 = vpop.f32.mrf.mxu1 }
 0x55c   :  { %v3048_v17 = vpop.f32.mrf.mxu0 }
 0x55d   :  { %v3054_v18 = vpop.f32.mrf.mxu1 }
 0x55e   :  { %v1003_v19 = vpop.f32.mrf.mxu0 }
 0x55f   :  { %v3244_v21 = vpack.i.bf16 %v1003_v19, %v811_v3  ;;  %v1051_v22 = vpop.f32.mrf.mxu1 }
 0x560   :  { %v3249_v23 = vpack.i.bf16 %v1051_v22, %v859_v48  ;;  %v3059_v24 = vpop.f32.mrf.mxu0 }
 0x561   :  { %v3065_v25 = vpop.f32.mrf.mxu1  ;;  %3245 = vrot.lane.b32.xlu0 %v3244_v21, %s3424_s2 }
 0x562   :  { %3250 = vrot.lane.b32.xlu1 %v3249_v23, %s3425_s21  ;;  %v1006_v26 = vpop.f32.mrf.mxu0 }
 0x563   :  { %v1054_v55 = vpop.f32.mrf.mxu1  ;;  %v1238_v26 = vsub.s32 2, %v3512_v41 }
 0x564   :  { %v3060_v54 = vpop.f32.mrf.mxu0 }
 0x565   :  { %v3066_v62 = vpop.f32.mrf.mxu1 }
 0x566   :  { %v1239_v62 = vrot.slane %v3518_v43, %v1238_v26 }
 0x56a   :  { %v1099_v2 = vpop.f32.mrf.mxu0 }
 0x56b   :  { %v3254_v51 = vpack.i.bf16 %v1099_v2, %v907_v10  ;;  %v1244_v2 = vsub.s32 3, %v3512_v41 }
 0x56c   :  { %v3071_v20 = vpop.f32.mrf.mxu0 }
 0x56d   :  { %3255 = vrot.lane.b32.xlu0 %v3254_v51, %s3426_s24 }
 0x56e   :  { %v1102_v28 = vpop.f32.mrf.mxu0 }
 0x570   :  { %v3072_v31 = vpop.f32.mrf.mxu0 }
 0x5d3   :  { %v3246_v32 = vpop.permute.xlu0 %3245 }
 0x5d4   :  { %v3248_v33 = vunpack.i.h.bf16 %v3246_v32  ;;  %v3247_v34 = vunpack.i.l.bf16 %v3246_v32  ;;  %v3251_v35 = vpop.permute.xlu1 %3250  ;;  %v1245_v32 = vrot.slane %v3518_v43, %v1244_v2 }
 0x5d5   :  { %v3253_v36 = vunpack.i.h.bf16 %v3251_v35  ;;  %v3252_v39 = vunpack.i.l.bf16 %v3251_v35 }
 0x5d6   :  { %v1117_v40 = vsel %vm234_vm2, %v763_v63, %v3247_v34  ;;  %v1134_v44 = vsel %vm234_vm2, %v955_v11, %v3248_v33 }
 0x5d7   :  { %v1135_v45 = vsel %vm1118_vm4, %v1134_v44, %v3253_v36  ;;  %v1119_v46 = vsel %vm1118_vm4, %v1117_v40, %v3252_v39  ;;  %v3280_v39 = vld [vmem:[%s4184_s6 + $0x18] sm:$0xff]   ;;  %v3281_v40 = vld [vmem:[%s4184_s6 + $0x10] sm:$0xff]   ;;  %v3282_v44 = vld [vmem:[%s4184_s6 + $0x8] sm:$0xff]  }
 0x5df   :  { %v3256_v58 = vpop.permute.xlu0 %3255 }
 0x5e0   :  { %v3258_v29 = vunpack.i.h.bf16 %v3256_v58  ;;  %v3257_v30 = vunpack.i.l.bf16 %v3256_v58  ;;  %v3283_v58 = vld [vmem:[%s4184_s6] sm:$0xff]  }
 0x5e2   :  { %v1121_v47 = vsel %vm1120_vm5, %v1119_v46, %v3257_v30  ;;  %v1136_v49 = vsel %vm1120_vm5, %v1135_v45, %v3258_v29  ;;  %v1255_v29 = vsub.s32 4, %v3512_v41 }
 0x5e3   :  { %v1137_v50 = vpack.c.bf16 %v1136_v49, %v1121_v47 }
 0x5e4   :  { %v1256_v30 = vrot.slane %v3518_v43, %v1255_v29 }
 0x5e5   :  { %3078 = vmatmul.mubr.msk.bf16.vlgmr.msra.gmra.mxu1 %vm43_vm0, %v1137_v50 }
 0x5e6   :  { %3097 = vmatprep.mubr.msk.bf16.mxu1 %vm3418_vm1, %v3417_v9  ;;  %3090 = vmatpush3.bf16.msra.mxu1 %v3280_v39 }
 0x5e7   :  { %3091 = vmatprep.subr.bf16.mxu1 %v3417_v9 }
 0x5ea   :  { %3092 = vmatpush3.bf16.msra.mxu1 %v3281_v40 }
 0x5eb   :  { %3093 = vmatprep.subr.bf16.mxu1 %v3417_v9 }
 0x5ee   :  { %3094 = vmatpush3.bf16.msra.mxu1 %v3282_v44 }
 0x5ef   :  { %3095 = vmatprep.subr.bf16.mxu1 %v3417_v9 }
 0x5f2   :  { %3096 = vmatpush3.bf16.msra.mxu1 %v3283_v58  ;;  %v3386_v58 = vld [vmem:[%s4185_s7] sm:$0xff] }
 0x5f3   :  { %3115 = vmatprep.subr.bf16.mxu1 %v3417_v9 }
 0x6a5   :  { %v1195_v57 = vpop.f32.mrf.mxu1 }
 0x6a6   :  { %v1196_v60 = vadd.f32 %v1195_v57, %v1145_v56 }
 0x6a7   :  { %v3079_v61 = vpop.f32.mrf.mxu1 }
 0x6a8   :  { %v1202_v63 = vadd.f32 %v1196_v60, %v3503_v37  ;;  %v3278_v37 = vld [vmem:[%s4183_s5 + $0x8] sm:$0xff]  }
 0x6a9   :  { %v1198_v0 = vpop.f32.mrf.mxu1  ;;  %3082 = vmatpush3.bf16.msra.mxu0 %v3278_v37 }
 0x6aa   :  { %v1199_v1 = vadd.f32 %v1198_v0, %v1145_v56  ;;  %v1204_v59 = vsel %vm43_vm0, %v1202_v63, 0.0  ;;  %v1212_v3 = vmul.f32 %v1202_v63, %v1202_v63  ;;  %3083 = vmatprep.subr.bf16.mxu0 %v3417_v9 }
 0x6ab   :  { %1205 = vadd.xlane.f32.xlu1 %v1204_v59  ;;  %v3080_v48 = vpop.f32.mrf.mxu1 }
 0x6ac   :  { %v1203_v52 = vadd.f32 %v1199_v1, %v3505_v38  ;;  %v1214_v4 = vsel %vm43_vm0, %v1212_v3, 0.0 }
 0x6ad   :  { %1215 = vadd.xlane.f32.xlu0 %v1214_v4  ;;  %3084 = vmatpush3.bf16.msra.mxu0 %v3279_v8 }
 0x6ae   :  { %v1207_v5 = vsel %vm43_vm0, %v1203_v52, 0.0  ;;  %v1213_v6 = vmul.f32 %v1203_v52, %v1203_v52  ;;  %3101 = vmatprep.subr.bf16.mxu0 %v3417_v9 }
 0x6b0   :  { %v1217_v7 = vsel %vm43_vm0, %v1213_v6, 0.0 }
 0x6b1   :  { %1208 = vadd.xlane.f32.xlu0 %v1207_v5  ;;  %v1334_v5 = vsub.s32 5, %v3512_v41 }
 0x6b3   :  { %v1335_v6 = vrot.slane %v3518_v43, %v1334_v5 }
 0x6b5   :  { %1218 = vadd.xlane.f32.xlu0 %v1217_v7 }
 0x734   :  { %v1206_v38 = vpop.xlane.xlu1 %1205 }
 0x735   :  { %v1210_v10 = vmul.f32 0.03125, %v1206_v38 }
 0x736   :  { %v1216_v11 = vpop.xlane.xlu0 %1215 }
 0x737   :  { %v1222_v12 = vmul.f32 %v1210_v10, %v1210_v10  ;;  %v1220_v13 = vmul.f32 0.03125, %v1216_v11  ;;  %v1228_v55 = vsub.f32 %v1202_v63, %v1210_v10 }
 0x739   :  { %v1224_v14 = vsub.f32 %v1220_v13, %v1222_v12 }
 0x73a   :  { %v1209_v15 = vpop.xlane.xlu0 %1208 }
 0x73b   :  { %v1226_v16 = vmax.f32 %v1224_v14, 0.0  ;;  %v1211_v17 = vmul.f32 0.03125, %v1209_v15 }
 0x73d   :  { %v1230_v18 = vadd.f32 1e-12, %v1226_v16  ;;  %v1223_v21 = vmul.f32 %v1211_v17, %v1211_v17  ;;  %v1229_v51 = vsub.f32 %v1203_v52, %v1211_v17 }
 0x73e   :  { %v1219_v19 = vpop.xlane.xlu0 %1218 }
 0x73f   :  { %v1221_v22 = vmul.f32 0.03125, %v1219_v19  ;;  %3330 = vrsqrt.f32 %v1230_v18  ;;  %v3284_v19 = vld [vmem:[%s4181_s3 + $0x18] sm:$0xff]  }
 0x741   :  { %v1225_v23 = vsub.f32 %v1221_v22, %v1223_v21  ;;  %v3285_v21 = vld [vmem:[%s4181_s3 + $0x10] sm:$0xff]  }
 0x743   :  { %v1227_v24 = vmax.f32 %v1225_v23, 0.0 }
 0x745   :  { %v1231_v25 = vadd.f32 1e-12, %v1227_v24 }
 0x747   :  { %3332 = vrsqrt.f32 %v1231_v25 }
 0x74c   :  { %v3331_v27 = vpop.eup %3330 }
 0x74d   :  { %v1234_v54 = vmul.f32 %v3331_v27, %v1228_v55 }
 0x74f   :  { %v1240_v31 = vmul.f32 %v1239_v62, %v1234_v54 }
 0x751   :  { %v1246_v34 = vadd.f32 %v1245_v32, %v1240_v31 }
 0x754   :  { %v3333_v20 = vpop.eup %3332 }
 0x755   :  { %v1235_v28 = vmul.f32 %v3333_v20, %v1229_v51 }
 0x757   :  { %v1241_v33 = vmul.f32 %v1239_v62, %v1235_v28 }
 0x759   :  { %v1247_v35 = vadd.f32 %v1245_v32, %v1241_v33 }
 0x75b   :  { %v1248_v36 = vpack.c.bf16 %v1247_v35, %v1246_v34 }
 0x75d   :  { %3086 = vmatmul.mubr.msk.bf16.vlgmr.msra.gmra.mxu0 %vm43_vm0, %v1248_v36  ;;  %v1441_v36 = vsub.s32 6, %v3512_v41 }
 0x75e   :  { %3105 = vmatprep.mubr.msk.bf16.mxu0 %vm3418_vm1, %v3417_v9  ;;  %3102 = vmatpush3.bf16.msra.mxu0 %v3284_v19 }
 0x75f   :  { %3103 = vmatprep.subr.bf16.mxu0 %v3417_v9 }
 0x762   :  { %3104 = vmatpush3.bf16.msra.mxu0 %v3285_v21 }
 0x763   :  { %3109 = vmatprep.subr.bf16.mxu0 %v3417_v9 }
 0x81d   :  { %v1306_v45 = vpop.f32.mrf.mxu0 }
 0x81e   :  { %v1307_v46 = vadd.f32 %v1306_v45, %v1256_v30  ;;  %v1447_v45 = vsub.s32 7, %v3512_v41 }
 0x81f   :  { %v3087_v47 = vpop.f32.mrf.mxu0 }
 0x820   :  { %v1315_v49 = vmul.f32 0.70710677, %v1307_v46  ;;  %v1313_v1 = vmul.f32 0.5, %v1307_v46 }
 0x821   :  { %v1309_v50 = vpop.f32.mrf.mxu0 }
 0x822   :  { %3334 = verf.f32 %v1315_v49  ;;  %v1310_v56 = vadd.f32 %v1309_v50, %v1256_v30  ;;  %v1442_v30 = vrot.slane %v3386_v58, %v1441_v36 }
 0x823   :  { %v3088_v57 = vpop.f32.mrf.mxu0 }
 0x824   :  { %v1316_v60 = vmul.f32 0.70710677, %v1310_v56  ;;  %v1314_v59 = vmul.f32 0.5, %v1310_v56  ;;  %v1448_v56 = vrot.slane %v3386_v58, %v1447_v45 }
 0x826   :  { %3336 = verf.f32 %v1316_v60 }
 0x82f   :  { %v3335_v61 = vpop.eup %3334 }
 0x830   :  { %v1319_v63 = vadd.f32 1.0, %v3335_v61 }
 0x832   :  { %v1321_v48 = vmul.f32 %v1319_v63, %v1313_v1 }
 0x833   :  { %v3337_v0 = vpop.eup %3336 }
 0x834   :  { %v1320_v3 = vadd.f32 1.0, %v3337_v0  ;;  %v3874_v0 = vld [vmem:[%s4185_s7 + $0x8] sm:$0xff] }
 0x835   :  { %v1462_v1 = vrot.slane %v3874_v0, %v97_v42 }
 0x836   :  { %v1322_v52 = vmul.f32 %v1320_v3, %v1314_v59 }
 0x838   :  { %v1323_v4 = vpack.c.bf16 %v1322_v52, %v1321_v48 }
 0x83a   :  { %3098 = vmatmul.mubr.msk.bf16.vlgmr.msra.gmra.mxu1 %vm1360_vm6, %v1323_v4 }
 0x83b   :  { %3117 = vmatprep.mubr.msk.bf16.mxu1 %vm3418_vm1, %v3417_v9 }
 0x8fa   :  { %v1398_v7 = vpop.f32.mrf.mxu1 }
 0x8fb   :  { %v1399_v37 = vadd.f32 %v1398_v7, %v1335_v6 }
 0x8fc   :  { %v3099_v8 = vpop.f32.mrf.mxu1 }
 0x8fd   :  { %v1405_v38 = vadd.f32 %v1399_v37, %v1246_v34 }
 0x8fe   :  { %v1401_v10 = vpop.f32.mrf.mxu1 }
 0x8ff   :  { %v1402_v11 = vadd.f32 %v1401_v10, %v1335_v6  ;;  %v1407_v12 = vsel %vm43_vm0, %v1405_v38, 0.0  ;;  %v1415_v13 = vmul.f32 %v1405_v38, %v1405_v38 }
 0x900   :  { %1408 = vadd.xlane.f32.xlu1 %v1407_v12  ;;  %v3100_v14 = vpop.f32.mrf.mxu1 }
 0x901   :  { %v1406_v15 = vadd.f32 %v1402_v11, %v1247_v35  ;;  %v1417_v16 = vsel %vm43_vm0, %v1415_v13, 0.0 }
 0x903   :  { %v1410_v17 = vsel %vm43_vm0, %v1406_v15, 0.0  ;;  %v1416_v18 = vmul.f32 %v1406_v15, %v1406_v15 }
 0x904   :  { %1418 = vadd.xlane.f32.xlu1 %v1417_v16  ;;  %1411 = vadd.xlane.f32.xlu0 %v1410_v17 }
 0x905   :  { %v1420_v43 = vsel %vm43_vm0, %v1416_v18, 0.0 }
 0x908   :  { %1421 = vadd.xlane.f32.xlu0 %v1420_v43 }
 0x989   :  { %v1409_v22 = vpop.xlane.xlu1 %1408 }
 0x98a   :  { %v1413_v23 = vmul.f32 0.03125, %v1409_v22 }
 0x98c   :  { %v1425_v27 = vmul.f32 %v1413_v23, %v1413_v23  ;;  %v1431_v39 = vsub.f32 %v1405_v38, %v1413_v23 }
 0x98d   :  { %v1419_v24 = vpop.xlane.xlu1 %1418  ;;  %v1412_v25 = vpop.xlane.xlu0 %1411 }
 0x98e   :  { %v1423_v55 = vmul.f32 0.03125, %v1419_v24  ;;  %v1414_v54 = vmul.f32 0.03125, %v1412_v25 }
 0x990   :  { %v1427_v62 = vsub.f32 %v1423_v55, %v1425_v27  ;;  %v1426_v28 = vmul.f32 %v1414_v54, %v1414_v54  ;;  %v1432_v46 = vsub.f32 %v1406_v15, %v1414_v54 }
 0x991   :  { %v1422_v51 = vpop.xlane.xlu0 %1421 }
 0x992   :  { %v1429_v20 = vmax.f32 %v1427_v62, 0.0  ;;  %v1424_v31 = vmul.f32 0.03125, %v1422_v51 }
 0x994   :  { %v1433_v32 = vadd.f32 1e-12, %v1429_v20  ;;  %v1428_v33 = vsub.f32 %v1424_v31, %v1426_v28 }
 0x996   :  { %3338 = vrsqrt.f32 %v1433_v32  ;;  %v1430_v34 = vmax.f32 %v1428_v33, 0.0 }
 0x998   :  { %v1434_v35 = vadd.f32 1e-12, %v1430_v34 }
 0x99a   :  { %3340 = vrsqrt.f32 %v1434_v35 }
 0x9a3   :  { %v3339_v40 = vpop.eup %3338 }
 0x9a4   :  { %v1437_v44 = vmul.f32 %v3339_v40, %v1431_v39  ;;  %v3387_v39 = vld [vmem:[%s4179_s1] ss:$0 sm:$0xff] }
 0x9a6   :  { %v1443_v50 = vmul.f32 %v1442_v30, %v1437_v44 }
 0x9a7   :  { %v3341_v47 = vpop.eup %3340 }
 0x9a8   :  { %v1438_v49 = vmul.f32 %v3341_v47, %v1432_v46  ;;  %v3862_v60 = vadd.f32 %v1448_v56, %v1443_v50  ;;  %v3388_v50 = vld [vmem:[%s4179_s1 + $0x1] ss:$0 sm:$0xff] }
 0x9aa   :  { %v1444_v57 = vmul.f32 %v1442_v30, %v1438_v49 }
 0x9ac   :  { %v3864_v61 = vadd.f32 %v1448_v56, %v1444_v57 }
 0x9ae   :  { %v1453_v63 = vpack.c.bf16 %v3864_v61, %v3862_v60 }
 0x9b0   :  { %3106 = vmatmul.mubr.msk.bf16.vlgmr.msra.gmra.mxu0 %vm43_vm0, %v1453_v63 }
 0x9b1   :  { %3111 = vmatprep.mubr.msk.bf16.mxu0 %vm3418_vm1, %v3417_v9 }
 0xa70   :  { %v1512_v59 = vpop.f32.mrf.mxu0 }
 0xa71   :  { %v1513_v3 = vadd.f32 %v1512_v59, %v1462_v1 }
 0xa72   :  { %v3107_v48 = vpop.f32.mrf.mxu0 }
 0xa73   :  { %1523 = vrot.lane.b32.xlu0 %v1513_v3, %s3419_s17  ;;  %1520 = vrot.lane.b32.xlu1 %v1513_v3, %s3420_s18  ;;  %v1539_v7 = vpack.c.bf16 %v1513_v3, %v1513_v3 }
 0xa74   :  { %v1515_v52 = vpop.f32.mrf.mxu0 }
 0xa75   :  { %v1516_v4 = vadd.f32 %v1515_v52, %v1462_v1  ;;  %v3389_v1 = vld [vmem:[%s4179_s1 + $0x2] ss:$0 sm:$0xff] }
 0xa76   :  { %v3108_v6 = vpop.f32.mrf.mxu0 }
 0xa77   :  { %1526 = vrot.lane.b32.xlu1 %v1513_v3, %s3421_s19  ;;  %1536 = vrot.lane.b32.xlu0 %v1516_v4, %s3421_s19  ;;  %v3896_v12 = vpack.c.bf16 %v1516_v4, %v1516_v4 }
 0xa7b   :  { %1530 = vrot.lane.b32.xlu1 %v1516_v4, %s3420_s18 }
 0xa7f   :  { %1533 = vrot.lane.b32.xlu1 %v1516_v4, %s3419_s17 }
 0xa83   :  { %1548 = vrot.lane.b32.xlu1 %v1539_v7, %s3422_s20 }
 0xae5   :  { %v1524_v42 = vpop.permute.xlu0 %1523  ;;  %v1521_v37 = vpop.permute.xlu1 %1520 }
 0xae6   :  { %v3886_v8 = vpack.c.bf16 %v1524_v42, %v1524_v42  ;;  %v3888_v38 = vpack.c.bf16 %v1521_v37, %v1521_v37 }
 0xae8   :  { %1597 = vrot.lane.b32.xlu0 %v3888_v38, %s3422_s20  ;;  %1646 = vrot.lane.b32.xlu1 %v3886_v8, %s3422_s20 }
 0xae9   :  { %v1527_v10 = vpop.permute.xlu1 %1526  ;;  %v1537_v15 = vpop.permute.xlu0 %1536 }
 0xaea   :  { %v3894_v11 = vpack.c.bf16 %v1527_v10, %v1527_v10  ;;  %v3906_v17 = vpack.c.bf16 %v1537_v15, %v1537_v15  ;;  %v3390_v10 = vld [vmem:[%s4179_s1 + $0x4] ss:$0 sm:$0xff]  ;;  %v3391_v15 = vld [vmem:[%s4179_s1 + $0x3] ss:$0 sm:$0xff] }
 0xaec   :  { %1695 = vrot.lane.b32.xlu0 %v3894_v11, %s3422_s20  ;;  %1744 = vrot.lane.b32.xlu1 %v3896_v12, %s3422_s20 }
 0xaed   :  { %v1531_v13 = vpop.permute.xlu1 %1530 }
 0xaee   :  { %v3902_v14 = vpack.c.bf16 %v1531_v13, %v1531_v13 }
 0xaf0   :  { %1793 = vrot.lane.b32.xlu0 %v3902_v14, %s3422_s20 }
 0xaf1   :  { %v1534_v16 = vpop.permute.xlu1 %1533 }
 0xaf2   :  { %v3908_v18 = vpack.c.bf16 %v1534_v16, %v1534_v16 }
 0xaf4   :  { %1891 = vrot.lane.b32.xlu0 %v3906_v17, %s3422_s20  ;;  %1842 = vrot.lane.b32.xlu1 %v3908_v18, %s3422_s20 }
 0xaf5   :  { %v1549_v43 = vpop.permute.xlu1 %1548 }
 0xaf6   :  { %v1554_v19 = vsel %vm234_vm2, %v1549_v43, 0 }
 0xaf7   :  { %3110 = vmatpush3.bf16.xpose.msra.mxu0 %v1554_v19 }
 0xaf8   :  { %2035 = vrot.lane.b32.xlu1 %v1539_v7, %s3423_s12  ;;  %3121 = vmatprep.subr.bf16.mxu0 %v3417_v9 }
 0xafe   :  { %3112 = vmatmul.mubr.msk.bf16.vlgmr.msra.gmra.mxu0 %vm234_vm2, %v1539_v7 }
 0xaff   :  { %3123 = vmatprep.mubr.msk.bf16.mxu0 %vm3418_vm1, %v3417_v9 }
 0xb5a   :  { %v1598_v21 = vpop.permute.xlu0 %1597  ;;  %v1647_v22 = vpop.permute.xlu1 %1646 }
 0xb5b   :  { %v1603_v23 = vsel %vm234_vm2, %v1598_v21, 0  ;;  %v1652_v24 = vsel %vm234_vm2, %v1647_v22, 0 }
 0xb5c   :  { %3116 = vmatpush3.bf16.xpose.msra.mxu1 %v1603_v23  ;;  %3122 = vmatpush3.bf16.xpose.msra.mxu0 %v1652_v24 }
 0xb5d   :  { %3127 = vmatprep.subr.bf16.mxu1 %v3417_v9  ;;  %3133 = vmatprep.subr.bf16.mxu0 %v3417_v9 }
 0xb5e   :  { %v1696_v25 = vpop.permute.xlu0 %1695  ;;  %v1745_v27 = vpop.permute.xlu1 %1744 }
 0xb5f   :  { %v1701_v55 = vsel %vm234_vm2, %v1696_v25, 0  ;;  %v1750_v54 = vsel %vm234_vm2, %v1745_v27, 0 }
 0xb62   :  { %v1794_v62 = vpop.permute.xlu0 %1793 }
 0xb63   :  { %3118 = vmatmul.mubr.msk.bf16.vlgmr.msra.gmra.mxu1 %vm234_vm2, %v3888_v38  ;;  %3124 = vmatmul.mubr.msk.bf16.vlgmr.msra.gmra.mxu0 %vm234_vm2, %v3886_v8  ;;  %v1799_v20 = vsel %vm234_vm2, %v1794_v62, 0  ;;  %v3392_v62 = vld [vmem:[%s4179_s1 + $0x5] ss:$0 sm:$0xff] }
 0xb64   :  { %3128 = vmatpush3.bf16.xpose.msra.mxu1 %v1701_v55  ;;  %3134 = vmatpush3.bf16.xpose.msra.mxu0 %v1750_v54 }
 0xb65   :  { %3129 = vmatprep.mubr.msk.bf16.mxu1 %vm3418_vm1, %v3417_v9  ;;  %3135 = vmatprep.mubr.msk.bf16.mxu0 %vm3418_vm1, %v3417_v9 }
 0xb66   :  { %3139 = vmatprep.subr.bf16.mxu1 %v3417_v9  ;;  %3145 = vmatprep.subr.bf16.mxu0 %v3417_v9  ;;  %v1843_v51 = vpop.permute.xlu1 %1842  ;;  %v1892_v31 = vpop.permute.xlu0 %1891 }
 0xb67   :  { %v1848_v28 = vsel %vm234_vm2, %v1843_v51, 0  ;;  %v1897_v33 = vsel %vm234_vm2, %v1892_v31, 0 }
 0xb6a   :  { %v2036_v32 = vpop.permute.xlu1 %2035 }
 0xb6b   :  { %3130 = vmatmul.mubr.msk.bf16.vlgmr.msra.gmra.mxu1 %vm234_vm2, %v3894_v11  ;;  %3136 = vmatmul.mubr.msk.bf16.vlgmr.msra.gmra.mxu0 %vm234_vm2, %v3896_v12  ;;  %v2041_v34 = vsel %vm725_vm3, %v2036_v32, 0 }
 0xb6c   :  { %3140 = vmatpush3.bf16.xpose.msra.mxu1 %v1799_v20  ;;  %3146 = vmatpush3.bf16.xpose.msra.mxu0 %v1848_v28  ;;  %v3393_v20 = vld [vmem:[%s4179_s1 + $0x6] ss:$0 sm:$0xff] }
 0xb6d   :  { %3141 = vmatprep.mubr.msk.bf16.mxu1 %vm3418_vm1, %v3417_v9  ;;  %3147 = vmatprep.mubr.msk.bf16.mxu0 %vm3418_vm1, %v3417_v9 }
 0xb6e   :  { %3151 = vmatprep.subr.bf16.mxu1 %v3417_v9  ;;  %3157 = vmatprep.subr.bf16.mxu0 %v3417_v9 }
 0xb73   :  { %3142 = vmatmul.mubr.msk.bf16.vlgmr.msra.gmra.mxu1 %vm234_vm2, %v3902_v14  ;;  %3148 = vmatmul.mubr.msk.bf16.vlgmr.msra.gmra.mxu0 %vm234_vm2, %v3908_v18 }
 0xb74   :  { %3152 = vmatpush3.bf16.xpose.msra.mxu1 %v1897_v33  ;;  %3158 = vmatpush3.bf16.msra.mxu0 %v2041_v34 }
 0xb75   :  { %3153 = vmatprep.mubr.msk.bf16.mxu1 %vm3418_vm1, %v3417_v9  ;;  %3163 = vmatprep.subr.bf16.mxu1 %v3417_v9 }
 0xb76   :  { %3159 = vmatprep.mubr.msk.bf16.mxu0 %vm3418_vm1, %v3417_v9  ;;  %3169 = vmatprep.subr.bf16.mxu0 %v3417_v9 }
 0xb7b   :  { %3154 = vmatmul.mubr.msk.bf16.vlgmr.msra.gmra.mxu1 %vm234_vm2, %v3906_v17 }
 0xb7c   :  { %3165 = vmatprep.mubr.msk.bf16.mxu1 %vm3418_vm1, %v3417_v9 }
 0xbbe   :  { %v1590_v35 = vpop.f32.mrf.mxu0 }
 0xbbf   :  { %v3967_v40 = vadd.f32 %v3387_v39, %v1590_v35 }
 0xbc0   :  { %v3113_v44 = vpop.f32.mrf.mxu0 }
 0xbc1   :  { %v1939_v58 = vsel %vm234_vm2, %v3967_v40, -inf }
 0xbc2   :  { %1940 = vmax.xlane.f32.xlu1 %v1939_v58  ;;  %v1593_v30 = vpop.f32.mrf.mxu0 }
 0xbc4   :  { %v3114_v46 = vpop.f32.mrf.mxu0 }
 0xbc5   :  { %v3394_v46 = vld [vmem:[%s4179_s1 + $0x7] ss:$0 sm:$0xff] }
 0xc23   :  { %v1639_v47 = vpop.f32.mrf.mxu1  ;;  %v1688_v49 = vpop.f32.mrf.mxu0 }
 0xc24   :  { %v3974_v56 = vadd.f32 %v3388_v50, %v1639_v47  ;;  %v3979_v59 = vadd.f32 %v3389_v1, %v1688_v49 }
 0xc25   :  { %v3119_v57 = vpop.f32.mrf.mxu1  ;;  %v3125_v63 = vpop.f32.mrf.mxu0 }
 0xc26   :  { %v1942_v3 = vsel %vm234_vm2, %v3974_v56, -inf  ;;  %v1945_v7 = vsel %vm234_vm2, %v3979_v59, -inf }
 0xc27   :  { %v1691_v48 = vpop.f32.mrf.mxu0  ;;  %1943 = vmax.xlane.f32.xlu0 %v1942_v3  ;;  %v1642_v52 = vpop.f32.mrf.mxu1 }
 0xc29   :  { %v3120_v4 = vpop.f32.mrf.mxu1  ;;  %v3126_v6 = vpop.f32.mrf.mxu0 }
 0xc2b   :  { %v1786_v42 = vpop.f32.mrf.mxu0  ;;  %1946 = vmax.xlane.f32.xlu0 %v1945_v7  ;;  %v1737_v37 = vpop.f32.mrf.mxu1 }
 0xc2c   :  { %v1787_v13 = vadd.f32 %v3390_v10, %v1786_v42  ;;  %v1738_v16 = vadd.f32 %v3391_v15, %v1737_v37 }
 0xc2d   :  { %v3131_v43 = vpop.f32.mrf.mxu1  ;;  %v3137_v19 = vpop.f32.mrf.mxu0 }
 0xc2e   :  { %v1951_v21 = vsel %vm234_vm2, %v1787_v13, -inf  ;;  %v1948_v22 = vsel %vm234_vm2, %v1738_v16, -inf }
 0xc2f   :  { %1952 = vmax.xlane.f32.xlu1 %v1951_v21  ;;  %v1789_v23 = vpop.f32.mrf.mxu0  ;;  %1949 = vmax.xlane.f32.xlu0 %v1948_v22  ;;  %v1740_v24 = vpop.f32.mrf.mxu1 }
 0xc31   :  { %v3132_v25 = vpop.f32.mrf.mxu1  ;;  %v3138_v27 = vpop.f32.mrf.mxu0 }
 0xc33   :  { %v1835_v55 = vpop.f32.mrf.mxu1  ;;  %v1884_v54 = vpop.f32.mrf.mxu0 }
 0xc34   :  { %v3996_v51 = vadd.f32 %v3392_v62, %v1835_v55  ;;  %v1885_v28 = vadd.f32 %v3393_v20, %v1884_v54 }
 0xc35   :  { %v3143_v31 = vpop.f32.mrf.mxu1  ;;  %v3149_v32 = vpop.f32.mrf.mxu0 }
 0xc36   :  { %v1957_v33 = vsel %vm234_vm2, %v1885_v28, -inf  ;;  %v1954_v34 = vsel %vm234_vm2, %v3996_v51, -inf }
 0xc37   :  { %1958 = vmax.xlane.f32.xlu1 %v1957_v33  ;;  %v1887_v35 = vpop.f32.mrf.mxu0  ;;  %1955 = vmax.xlane.f32.xlu0 %v1954_v34  ;;  %v1838_v39 = vpop.f32.mrf.mxu1 }
 0xc39   :  { %v3144_v44 = vpop.f32.mrf.mxu1  ;;  %v3150_v58 = vpop.f32.mrf.mxu0 }
 0xc3b   :  { %v1933_v30 = vpop.f32.mrf.mxu1 }
 0xc3c   :  { %v4007_v47 = vadd.f32 %v3394_v46, %v1933_v30 }
 0xc3d   :  { %v3155_v49 = vpop.f32.mrf.mxu1 }
 0xc3e   :  { %v1960_v50 = vsel %vm234_vm2, %v4007_v47, -inf }
 0xc3f   :  { %1961 = vmax.xlane.f32.xlu0 %v1960_v50  ;;  %v1936_v57 = vpop.f32.mrf.mxu1 }
 0xc41   :  { %v3156_v63 = vpop.f32.mrf.mxu1 }
 0xc48   :  { %2131 = vrot.lane.b32.xlu1 %v3886_v8, %s3423_s12 }
 0xc4b   :  { %v1941_v1 = vpop.xlane.xlu1 %1940 }
 0xc4c   :  { %2179 = vrot.lane.b32.xlu1 %v3894_v11, %s3423_s12  ;;  %v1963_v3 = vsub.f32 %v3967_v40, %v1941_v1 }
 0xc4e   :  { %v1971_v48 = vmul.f32 1.442695, %v1963_v3 }
 0xc50   :  { %3342 = vpow2.f32 %v1971_v48 }
 0xc55   :  { %2083 = vrot.lane.b32.xlu0 %v3888_v38, %s3423_s12 }
 0xc5d   :  { %v4018_v52 = vpop.eup %3342 }
 0xc5e   :  { %v1987_v4 = vsel %vm234_vm2, %v4018_v52, 0.0 }
 0xc70   :  { %1988 = vadd.xlane.f32.xlu1 %v1987_v4 }
 0xc81   :  { %2227 = vrot.lane.b32.xlu1 %v3896_v12, %s3423_s12 }
 0xcb0   :  { %v1944_v8 = vpop.xlane.xlu0 %1943 }
 0xcb1   :  { %v1964_v11 = vsub.f32 %v3974_v56, %v1944_v8 }
 0xcb3   :  { %v1973_v6 = vmul.f32 1.442695, %v1964_v11 }
 0xcb4   :  { %v1947_v7 = vpop.xlane.xlu0 %1946 }
 0xcb5   :  { %3344 = vpow2.f32 %v1973_v6  ;;  %v1965_v38 = vsub.f32 %v3979_v59, %v1947_v7 }
 0xcb7   :  { %v1975_v40 = vmul.f32 1.442695, %v1965_v38 }
 0xcb8   :  { %v1953_v42 = vpop.xlane.xlu1 %1952  ;;  %v1950_v37 = vpop.xlane.xlu0 %1949 }
 0xcb9   :  { %3346 = vpow2.f32 %v1975_v40  ;;  %v1967_v10 = vsub.f32 %v1787_v13, %v1953_v42  ;;  %v1966_v15 = vsub.f32 %v1738_v16, %v1950_v37 }
 0xcbb   :  { %v1979_v43 = vmul.f32 1.442695, %v1967_v10  ;;  %v1977_v19 = vmul.f32 1.442695, %v1966_v15 }
 0xcbd   :  { %3348 = vpow2.f32 %v1979_v43 }
 0xcbe   :  { %3350 = vpow2.f32 %v1977_v19 }
 0xcc0   :  { %v1959_v21 = vpop.xlane.xlu1 %1958  ;;  %v1956_v24 = vpop.xlane.xlu0 %1955 }
 0xcc1   :  { %v1969_v12 = vsub.f32 %v1885_v28, %v1959_v21  ;;  %v1968_v32 = vsub.f32 %v3996_v51, %v1956_v24 }
 0xcc2   :  { %v3345_v22 = vpop.eup %3344 }
 0xcc3   :  { %v1983_v23 = vmul.f32 1.442695, %v1969_v12  ;;  %v1990_v56 = vsel %vm234_vm2, %v3345_v22, 0.0  ;;  %v1981_v33 = vmul.f32 1.442695, %v1968_v32 }
 0xcc4   :  { %1991 = vadd.xlane.f32.xlu0 %v1990_v56  ;;  %v2132_v35 = vpop.permute.xlu1 %2131 }
 0xcc5   :  { %3352 = vpow2.f32 %v1983_v23  ;;  %v2137_v50 = vsel %vm725_vm3, %v2132_v35, 0 }
 0xcc6   :  { %v3347_v59 = vpop.eup %3346  ;;  %3354 = vpow2.f32 %v1981_v33 }
 0xcc7   :  { %v1993_v25 = vsel %vm234_vm2, %v3347_v59, 0.0 }
 0xcc8   :  { %1994 = vadd.xlane.f32.xlu1 %v1993_v25  ;;  %v1962_v27 = vpop.xlane.xlu0 %1961  ;;  %v2180_v44 = vpop.permute.xlu1 %2179 }
 0xcc9   :  { %v1970_v34 = vsub.f32 %v4007_v47, %v1962_v27  ;;  %v2185_v7 = vsel %vm725_vm3, %v2180_v44, 0 }
 0xcca   :  { %v4028_v13 = vpop.eup %3348 }
 0xccb   :  { %v4030_v16 = vpop.eup %3350  ;;  %v1999_v55 = vsel %vm234_vm2, %v4028_v13, 0.0  ;;  %v1985_v39 = vmul.f32 1.442695, %v1970_v34 }
 0xccc   :  { %2000 = vadd.xlane.f32.xlu1 %v1999_v55  ;;  %v1996_v54 = vsel %vm234_vm2, %v4030_v16, 0.0  ;;  %v2084_v62 = vpop.permute.xlu0 %2083 }
 0xccd   :  { %1997 = vadd.xlane.f32.xlu0 %v1996_v54  ;;  %v2089_v20 = vsel %vm725_vm3, %v2084_v62, 0  ;;  %3356 = vpow2.f32 %v1985_v39 }
 0xcce   :  { %3164 = vmatpush3.bf16.msra.mxu1 %v2089_v20 }
 0xccf   :  { %3175 = vmatprep.subr.bf16.mxu1 %v3417_v9 }
 0xcd2   :  { %v4038_v28 = vpop.eup %3352 }
 0xcd3   :  { %v2005_v31 = vsel %vm234_vm2, %v4038_v28, 0.0  ;;  %v4048_v30 = vpop.eup %3354 }
 0xcd4   :  { %2006 = vadd.xlane.f32.xlu1 %v2005_v31 }
 0xcda   :  { %v4052_v46 = vpop.eup %3356 }
 0xce3   :  { %2275 = vrot.lane.b32.xlu0 %v3902_v14, %s3423_s12  ;;  %v2002_v14 = vsel %vm234_vm2, %v4048_v30, 0.0 }
 0xce5   :  { %2323 = vrot.lane.b32.xlu1 %v3908_v18, %s3423_s12  ;;  %v2008_v18 = vsel %vm234_vm2, %v4052_v46, 0.0 }
 0xcf9   :  { %v1989_v58 = vpop.xlane.xlu1 %1988 }
 0xcfa   :  { %3358 = vrcp.f32 %v1989_v58 }
 0xcfd   :  { %v2228_v57 = vpop.permute.xlu1 %2227 }
 0xcfe   :  { %v2233_v37 = vsel %vm725_vm3, %v2228_v57, 0 }
 0xd02   :  { %2003 = vadd.xlane.f32.xlu0 %v2002_v14 }
 0xd06   :  { %2009 = vadd.xlane.f32.xlu0 %v2008_v18 }
 0xd07   :  { %v3359_v51 = vpop.eup %3358 }
 0xd08   :  { %v2019_v47 = vmul.f32 %v3359_v51, %v4018_v52 }
 0xd0a   :  { %v2027_v49 = vpack.c.bf16 %v2019_v47, %v2019_v47 }
 0xd0c   :  { %3160 = vmatmul.mubr.msk.bf16.vlgmr.msra.gmra.mxu0 %vm234_vm2, %v2027_v49 }
 0xd0d   :  { %3170 = vmatpush3.bf16.msra.mxu0 %v2137_v50  ;;  %3171 = vmatprep.mubr.msk.bf16.mxu0 %vm3418_vm1, %v3417_v9 }
 0xd0e   :  { %3181 = vmatprep.subr.bf16.mxu0 %v3417_v9 }
 0xd1c   :  { %2371 = vrot.lane.b32.xlu0 %v3906_v17, %s3423_s12 }
 0xd4d   :  { %v1992_v63 = vpop.xlane.xlu0 %1991 }
 0xd4e   :  { %3360 = vrcp.f32 %v1992_v63 }
 0xd51   :  { %v1995_v1 = vpop.xlane.xlu1 %1994 }
 0xd52   :  { %3362 = vrcp.f32 %v1995_v1 }
 0xd55   :  { %v2001_v3 = vpop.xlane.xlu1 %2000 }
 0xd56   :  { %3364 = vrcp.f32 %v2001_v3  ;;  %v1998_v48 = vpop.xlane.xlu0 %1997 }
 0xd57   :  { %3366 = vrcp.f32 %v1998_v48 }
 0xd5a   :  { %v2276_v15 = vpop.permute.xlu0 %2275 }
 0xd5b   :  { %v3361_v52 = vpop.eup %3360  ;;  %v2281_v21 = vsel %vm725_vm3, %v2276_v15, 0 }
 0xd5c   :  { %v2020_v4 = vmul.f32 %v3361_v52, %v3345_v22 }
 0xd5d   :  { %v2007_v8 = vpop.xlane.xlu1 %2006 }
 0xd5e   :  { %3368 = vrcp.f32 %v2007_v8  ;;  %v2028_v11 = vpack.c.bf16 %v2020_v4, %v2020_v4 }
 0xd5f   :  { %v3363_v6 = vpop.eup %3362 }
 0xd60   :  { %3166 = vmatmul.mubr.msk.bf16.vlgmr.msra.gmra.mxu1 %vm234_vm2, %v2028_v11  ;;  %v2021_v17 = vmul.f32 %v3363_v6, %v3347_v59 }
 0xd61   :  { %3176 = vmatpush3.bf16.msra.mxu1 %v2185_v7  ;;  %3177 = vmatprep.mubr.msk.bf16.mxu1 %vm3418_vm1, %v3417_v9  ;;  %v2324_v12 = vpop.permute.xlu1 %2323  ;;  %v3286_v7 = vld [vmem:[%s4182_s4 + $0x18] sm:$0xff]  }
 0xd62   :  { %v2029_v38 = vpack.c.bf16 %v2021_v17, %v2021_v17  ;;  %3187 = vmatprep.subr.bf16.mxu1 %v3417_v9  ;;  %v2329_v56 = vsel %vm725_vm3, %v2324_v12, 0  ;;  %v3287_v17 = vld [vmem:[%s4182_s4 + $0x10] sm:$0xff]  }
 0xd63   :  { %v3365_v40 = vpop.eup %3364 }
 0xd64   :  { %v3367_v42 = vpop.eup %3366  ;;  %3172 = vmatmul.mubr.msk.bf16.vlgmr.msra.gmra.mxu0 %vm234_vm2, %v2029_v38  ;;  %v2023_v43 = vmul.f32 %v3365_v40, %v4028_v13 }
 0xd65   :  { %3182 = vmatpush3.bf16.msra.mxu0 %v2233_v37  ;;  %v2022_v10 = vmul.f32 %v3367_v42, %v4030_v16  ;;  %3183 = vmatprep.mubr.msk.bf16.mxu0 %vm3418_vm1, %v3417_v9 }
 0xd66   :  { %3193 = vmatprep.subr.bf16.mxu0 %v3417_v9  ;;  %v2031_v22 = vpack.c.bf16 %v2023_v43, %v2023_v43 }
 0xd67   :  { %v2030_v19 = vpack.c.bf16 %v2022_v10, %v2022_v10 }
 0xd69   :  { %3178 = vmatmul.mubr.msk.bf16.vlgmr.msra.gmra.mxu1 %vm234_vm2, %v2030_v19 }
 0xd6a   :  { %3188 = vmatpush3.bf16.msra.mxu1 %v2281_v21  ;;  %3189 = vmatprep.mubr.msk.bf16.mxu1 %vm3418_vm1, %v3417_v9 }
 0xd6b   :  { %v3369_v23 = vpop.eup %3368  ;;  %3199 = vmatprep.subr.bf16.mxu1 %v3417_v9 }
 0xd6c   :  { %3184 = vmatmul.mubr.msk.bf16.vlgmr.msra.gmra.mxu0 %vm234_vm2, %v2031_v22  ;;  %v2025_v24 = vmul.f32 %v3369_v23, %v4038_v28 }
 0xd6d   :  { %3194 = vmatpush3.bf16.msra.mxu0 %v2329_v56  ;;  %3195 = vmatprep.mubr.msk.bf16.mxu0 %vm3418_vm1, %v3417_v9 }
 0xd6e   :  { %3205 = vmatprep.subr.bf16.mxu0 %v3417_v9  ;;  %v2033_v59 = vpack.c.bf16 %v2025_v24, %v2025_v24 }
 0xd74   :  { %3196 = vmatmul.mubr.msk.bf16.vlgmr.msra.gmra.mxu0 %vm234_vm2, %v2033_v59 }
 0xd75   :  { %3209 = vmatprep.mubr.msk.bf16.mxu0 %vm3418_vm1, %v3417_v9  ;;  %3206 = vmatpush3.bf16.msra.mxu0 %v3286_v7 }
 0xd76   :  { %3207 = vmatprep.subr.bf16.mxu0 %v3417_v9 }
 0xd79   :  { %3208 = vmatpush3.bf16.msra.mxu0 %v3287_v17 }
 0xd7a   :  { %3221 = vmatprep.subr.bf16.mxu0 %v3417_v9 }
 0xd8b   :  { %v2004_v25 = vpop.xlane.xlu0 %2003 }
 0xd8c   :  { %3370 = vrcp.f32 %v2004_v25 }
 0xd8f   :  { %v2010_v27 = vpop.xlane.xlu0 %2009 }
 0xd90   :  { %3372 = vrcp.f32 %v2010_v27 }
 0xd93   :  { %v2372_v55 = vpop.permute.xlu0 %2371 }
 0xd94   :  { %v2377_v20 = vsel %vm725_vm3, %v2372_v55, 0 }
 0xd99   :  { %v3371_v13 = vpop.eup %3370 }
 0xd9a   :  { %v2024_v16 = vmul.f32 %v3371_v13, %v4048_v30 }
 0xd9c   :  { %v2032_v54 = vpack.c.bf16 %v2024_v16, %v2024_v16 }
 0xd9d   :  { %v3373_v62 = vpop.eup %3372 }
 0xd9e   :  { %3190 = vmatmul.mubr.msk.bf16.vlgmr.msra.gmra.mxu1 %vm234_vm2, %v2032_v54  ;;  %v2026_v28 = vmul.f32 %v3373_v62, %v4052_v46 }
 0xd9f   :  { %3200 = vmatpush3.bf16.msra.mxu1 %v2377_v20  ;;  %3201 = vmatprep.mubr.msk.bf16.mxu1 %vm3418_vm1, %v3417_v9 }
 0xda0   :  { %3213 = vmatprep.subr.bf16.mxu1 %v3417_v9  ;;  %v2034_v31 = vpack.c.bf16 %v2026_v28, %v2026_v28 }
 0xda6   :  { %3202 = vmatmul.mubr.msk.bf16.vlgmr.msra.gmra.mxu1 %vm234_vm2, %v2034_v31 }
 0xda7   :  { %3217 = vmatprep.mubr.msk.bf16.mxu1 %vm3418_vm1, %v3417_v9 }
 0xdcc   :  { %v2077_v32 = vpop.f32.mrf.mxu0 }
 0xdce   :  { %v3161_v33 = vpop.f32.mrf.mxu0 }
 0xdd0   :  { %v2080_v34 = vpop.f32.mrf.mxu0 }
 0xdd2   :  { %v3162_v35 = vpop.f32.mrf.mxu0 }
 0xe20   :  { %v2125_v39 = vpop.f32.mrf.mxu1 }
 0xe22   :  { %v3167_v44 = vpop.f32.mrf.mxu1 }
 0xe24   :  { %v2128_v58 = vpop.f32.mrf.mxu1  ;;  %v2173_v30 = vpop.f32.mrf.mxu0 }
 0xe26   :  { %v3168_v14 = vpop.f32.mrf.mxu1  ;;  %v3173_v18 = vpop.f32.mrf.mxu0 }
 0xe28   :  { %v2176_v51 = vpop.f32.mrf.mxu0 }
 0xe29   :  { %v2221_v46 = vpop.f32.mrf.mxu1 }
 0xe2a   :  { %v3174_v47 = vpop.f32.mrf.mxu0 }
 0xe2b   :  { %v3179_v49 = vpop.f32.mrf.mxu1 }
 0xe2c   :  { %v2269_v50 = vpop.f32.mrf.mxu0 }
 0xe2d   :  { %v2224_v57 = vpop.f32.mrf.mxu1 }
 0xe2e   :  { %v3185_v63 = vpop.f32.mrf.mxu0  ;;  %v3289_v57 = vld [vmem:[%s4183_s5 + $0x10] sm:$0xff]  }
 0xe2f   :  { %v3180_v1 = vpop.f32.mrf.mxu1 }
 0xe30   :  { %v2272_v3 = vpop.f32.mrf.mxu0 }
 0xe32   :  { %v3186_v48 = vpop.f32.mrf.mxu0 }
 0xe34   :  { %v2365_v52 = vpop.f32.mrf.mxu0 }
 0xe35   :  { %v3264_v4 = vpack.i.bf16 %v2365_v52, %v2173_v30 }
 0xe36   :  { %v3197_v8 = vpop.f32.mrf.mxu0 }
 0xe37   :  { %3265 = vrot.lane.b32.xlu0 %v3264_v4, %s3425_s21 }
 0xe38   :  { %v2368_v11 = vpop.f32.mrf.mxu0 }
 0xe3a   :  { %v3198_v6 = vpop.f32.mrf.mxu0 }
 0xe5e   :  { %v2317_v38 = vpop.f32.mrf.mxu1 }
 0xe5f   :  { %v3259_v40 = vpack.i.bf16 %v2317_v38, %v2125_v39 }
 0xe60   :  { %v3191_v42 = vpop.f32.mrf.mxu1 }
 0xe61   :  { %3260 = vrot.lane.b32.xlu1 %v3259_v40, %s3424_s2 }
 0xe62   :  { %v2320_v37 = vpop.f32.mrf.mxu1 }
 0xe64   :  { %v3192_v10 = vpop.f32.mrf.mxu1 }
 0xe66   :  { %v2413_v15 = vpop.f32.mrf.mxu1 }
 0xe67   :  { %v3269_v43 = vpack.i.bf16 %v2413_v15, %v2221_v46 }
 0xe68   :  { %v3203_v19 = vpop.f32.mrf.mxu1 }
 0xe69   :  { %3270 = vrot.lane.b32.xlu1 %v3269_v43, %s3426_s24  ;;  %v2552_v19 = vrot.slane %v3874_v0, %v1238_v26  ;;  %v3291_v26 = vld [vmem:[%s4184_s6 + $0x30] sm:$0xff]  }
 0xe6a   :  { %v2416_v21 = vpop.f32.mrf.mxu1 }
 0xe6c   :  { %v3204_v12 = vpop.f32.mrf.mxu1 }
 0xea9   :  { %v3266_v24 = vpop.permute.xlu0 %3265 }
 0xeaa   :  { %v3268_v27 = vunpack.i.h.bf16 %v3266_v24  ;;  %v3267_v13 = vunpack.i.l.bf16 %v3266_v24 }
 0xed3   :  { %v3261_v22 = vpop.permute.xlu1 %3260 }
 0xed4   :  { %v3263_v23 = vunpack.i.h.bf16 %v3261_v22  ;;  %v3262_v56 = vunpack.i.l.bf16 %v3261_v22 }
 0xed6   :  { %v2446_v59 = vsel %vm234_vm2, %v2269_v50, %v3263_v23  ;;  %v2431_v25 = vsel %vm234_vm2, %v2077_v32, %v3262_v56  ;;  %v2458_v32 = vrot.slane %v3874_v0, %v1144_v53  ;;  %v2558_v56 = vrot.slane %v3874_v0, %v1244_v2  ;;  %v3292_v2 = vld [vmem:[%s4184_s6 + $0x28] sm:$0xff]  }
 0xed7   :  { %v2432_v62 = vsel %vm1118_vm4, %v2431_v25, %v3267_v13  ;;  %v2447_v20 = vsel %vm1118_vm4, %v2446_v59, %v3268_v27  ;;  %v3290_v13 = vld [vmem:[%s4184_s6 + $0x38] sm:$0xff]  }
 0xedb   :  { %v3271_v16 = vpop.permute.xlu1 %3270 }
 0xedc   :  { %v3273_v55 = vunpack.i.h.bf16 %v3271_v16  ;;  %v3272_v54 = vunpack.i.l.bf16 %v3271_v16  ;;  %v3293_v16 = vld [vmem:[%s4184_s6 + $0x20] sm:$0xff]   ;;  %s3427_s6 = smov [#allocation2]  }
 0xedd   :  { %s2778_s19 = sshll.u32 %s3427_s6, 4  ;;  %s2779_s19 = int_to_ptr.vmem [resolvable:$true] %s2778_s19 }
 0xede   :  { %v2448_v28 = vsel %vm1120_vm5, %v2447_v20, %v3273_v55  ;;  %v2433_v31 = vsel %vm1120_vm5, %v2432_v62, %v3272_v54  ;;  %v2570_v55 = vrot.slane %v3874_v0, %v1255_v29  ;;  %v2650_v29 = vrot.slane %v3874_v0, %v1334_v5  ;;  %s3395_s20 = scalar_lea.vmem %s2779_s19, 32  ;;  %p3400_p1 = scmp.lt.s32.totalorder %s2779_s19, %s2779_s19 }
 0xedf   :  { %v2449_v33 = vpack.c.bf16 %v2448_v28, %v2433_v31  ;;  %p3396_p0 = scmp.ne.s32.totalorder %s2779_s19, %s3395_s20  ;;  %p3401_p2 = scmp.lt.s32.totalorder %s3395_s20, %s3395_s20 }
 0xee1   :  { %3210 = vmatmul.mubr.msk.bf16.vlgmr.msra.gmra.mxu0 %vm43_vm0, %v2449_v33  ;;  %p3402_p3 = por %p3401_p2, %p3400_p1 }
 0xee2   :  { %3229 = vmatprep.mubr.msk.bf16.mxu0 %vm3418_vm1, %v3417_v9  ;;  %3222 = vmatpush3.bf16.msra.mxu0 %v3290_v13 }
 0xee3   :  { %3223 = vmatprep.subr.bf16.mxu0 %v3417_v9  ;;  %p3403_p4 = pnand %p3402_p3, %p3396_p0 }
 0xee6   :  { %3224 = vmatpush3.bf16.msra.mxu0 %v3291_v26 }
 0xee7   :  { %3225 = vmatprep.subr.bf16.mxu0 %v3417_v9 }
 0xeea   :  { %3226 = vmatpush3.bf16.msra.mxu0 %v3292_v2  ;;  %v2762_v2 = vrot.slane %v3874_v0, %v1447_v45 }
 0xeeb   :  { %3227 = vmatprep.subr.bf16.mxu0 %v3417_v9 }
 0xeee   :  { %3228 = vmatpush3.bf16.msra.mxu0 %v3293_v16 }
 0xfa1   :  { %v2508_v34 = vpop.f32.mrf.mxu0 }
 0xfa2   :  { %v2509_v35 = vadd.f32 %v2508_v34, %v2458_v32 }
 0xfa3   :  { %v3211_v39 = vpop.f32.mrf.mxu0 }
 0xfa4   :  { %v2515_v44 = vadd.f32 %v2509_v35, %v3862_v60  ;;  %v3288_v60 = vld [vmem:[%s4183_s5 + $0x18] sm:$0xff]  }
 0xfa5   :  { %v2511_v58 = vpop.f32.mrf.mxu0  ;;  %3214 = vmatpush3.bf16.msra.mxu1 %v3288_v60 }
 0xfa6   :  { %v2512_v30 = vadd.f32 %v2511_v58, %v2458_v32  ;;  %v2517_v14 = vsel %vm43_vm0, %v2515_v44, 0.0  ;;  %v2525_v18 = vmul.f32 %v2515_v44, %v2515_v44  ;;  %3215 = vmatprep.subr.bf16.mxu1 %v3417_v9 }
 0xfa7   :  { %2518 = vadd.xlane.f32.xlu0 %v2517_v14  ;;  %v3212_v51 = vpop.f32.mrf.mxu0 }
 0xfa8   :  { %v2516_v46 = vadd.f32 %v2512_v30, %v3864_v61  ;;  %v2527_v47 = vsel %vm43_vm0, %v2525_v18, 0.0 }
 0xfa9   :  { %3216 = vmatpush3.bf16.msra.mxu1 %v3289_v57 }
 0xfaa   :  { %v2520_v49 = vsel %vm43_vm0, %v2516_v46, 0.0  ;;  %v2526_v50 = vmul.f32 %v2516_v46, %v2516_v46 }
 0xfab   :  { %2528 = vadd.xlane.f32.xlu0 %v2527_v47  ;;  %2521 = vadd.xlane.f32.xlu1 %v2520_v49 }
 0xfac   :  { %v2530_v53 = vsel %vm43_vm0, %v2526_v50, 0.0 }
 0xfaf   :  { %2531 = vadd.xlane.f32.xlu0 %v2530_v53 }
0x1030   :  { %v2519_v61 = vpop.xlane.xlu0 %2518 }
0x1031   :  { %v2523_v63 = vmul.f32 0.03125, %v2519_v61 }
0x1033   :  { %v2535_v48 = vmul.f32 %v2523_v63, %v2523_v63  ;;  %v2541_v10 = vsub.f32 %v2515_v44, %v2523_v63 }
0x1034   :  { %v2529_v1 = vpop.xlane.xlu0 %2528  ;;  %v2522_v3 = vpop.xlane.xlu1 %2521 }
0x1035   :  { %v2533_v52 = vmul.f32 0.03125, %v2529_v1  ;;  %v2524_v4 = vmul.f32 0.03125, %v2522_v3 }
0x1037   :  { %v2537_v8 = vsub.f32 %v2533_v52, %v2535_v48  ;;  %v2536_v7 = vmul.f32 %v2524_v4, %v2524_v4  ;;  %v2542_v21 = vsub.f32 %v2516_v46, %v2524_v4 }
0x1038   :  { %v2532_v11 = vpop.xlane.xlu0 %2531 }
0x1039   :  { %v2539_v6 = vmax.f32 %v2537_v8, 0.0  ;;  %v2534_v17 = vmul.f32 0.03125, %v2532_v11 }
0x103b   :  { %v2543_v38 = vadd.f32 1e-12, %v2539_v6  ;;  %v2538_v40 = vsub.f32 %v2534_v17, %v2536_v7 }
0x103d   :  { %3374 = vrsqrt.f32 %v2543_v38  ;;  %v2540_v42 = vmax.f32 %v2538_v40, 0.0 }
0x103f   :  { %v2544_v37 = vadd.f32 1e-12, %v2540_v42 }
0x1041   :  { %3376 = vrsqrt.f32 %v2544_v37 }
0x104a   :  { %v3375_v15 = vpop.eup %3374 }
0x104b   :  { %v2547_v43 = vmul.f32 %v3375_v15, %v2541_v10 }
0x104d   :  { %v2553_v23 = vmul.f32 %v2552_v19, %v2547_v43 }
0x104e   :  { %v3377_v12 = vpop.eup %3376 }
0x104f   :  { %v2548_v22 = vmul.f32 %v3377_v12, %v2542_v21  ;;  %v2559_v59 = vadd.f32 %v2558_v56, %v2553_v23 }
0x1051   :  { %v2554_v24 = vmul.f32 %v2552_v19, %v2548_v22 }
0x1053   :  { %v2560_v25 = vadd.f32 %v2558_v56, %v2554_v24 }
0x1055   :  { %v2561_v27 = vpack.c.bf16 %v2560_v25, %v2559_v59 }
0x1057   :  { %3218 = vmatmul.mubr.msk.bf16.vlgmr.msra.gmra.mxu1 %vm43_vm0, %v2561_v27 }
0x1117   :  { %v2620_v54 = vpop.f32.mrf.mxu1 }
0x1118   :  { %v2621_v62 = vadd.f32 %v2620_v54, %v2570_v55 }
0x1119   :  { %v3219_v20 = vpop.f32.mrf.mxu1 }
0x111a   :  { %v2629_v28 = vmul.f32 0.70710677, %v2621_v62  ;;  %v2627_v44 = vmul.f32 0.5, %v2621_v62 }
0x111b   :  { %v2623_v31 = vpop.f32.mrf.mxu1 }
0x111c   :  { %3378 = verf.f32 %v2629_v28  ;;  %v2624_v33 = vadd.f32 %v2623_v31, %v2570_v55 }
0x111d   :  { %v3220_v32 = vpop.f32.mrf.mxu1 }
0x111e   :  { %v2630_v34 = vmul.f32 0.70710677, %v2624_v33  ;;  %v2628_v58 = vmul.f32 0.5, %v2624_v33 }
0x1120   :  { %3380 = verf.f32 %v2630_v34 }
0x1129   :  { %v3379_v9 = vpop.eup %3378 }
0x112a   :  { %v2633_v35 = vadd.f32 1.0, %v3379_v9 }
0x112c   :  { %v2635_v14 = vmul.f32 %v2633_v35, %v2627_v44 }
0x112d   :  { %v3381_v39 = vpop.eup %3380 }
0x112e   :  { %v2634_v30 = vadd.f32 1.0, %v3381_v39 }
0x1130   :  { %v2636_v18 = vmul.f32 %v2634_v30, %v2628_v58 }
0x1132   :  { %v2637_v51 = vpack.c.bf16 %v2636_v18, %v2635_v14 }
0x1134   :  { %3230 = vmatmul.mubr.msk.bf16.vlgmr.msra.gmra.mxu0 %vm1360_vm6, %v2637_v51 }
0x11f4   :  { %v2712_v46 = vpop.f32.mrf.mxu0 }
0x11f5   :  { %v2713_v47 = vadd.f32 %v2712_v46, %v2650_v29 }
0x11f6   :  { %v3231_v49 = vpop.f32.mrf.mxu0 }
0x11f7   :  { %v2719_v50 = vadd.f32 %v2713_v47, %v2559_v59  ;;  %v2756_v59 = vrot.slane %v3874_v0, %v1441_v36 }
0x11f8   :  { %v2715_v53 = vpop.f32.mrf.mxu0 }
0x11f9   :  { %v2716_v60 = vadd.f32 %v2715_v53, %v2650_v29  ;;  %v2721_v57 = vsel %vm43_vm0, %v2719_v50, 0.0  ;;  %v2729_v61 = vmul.f32 %v2719_v50, %v2719_v50 }
0x11fa   :  { %2722 = vadd.xlane.f32.xlu1 %v2721_v57  ;;  %v3232_v63 = vpop.f32.mrf.mxu0 }
0x11fb   :  { %v2720_v1 = vadd.f32 %v2716_v60, %v2560_v25  ;;  %v2731_v3 = vsel %vm43_vm0, %v2729_v61, 0.0 }
0x11fd   :  { %v2724_v48 = vsel %vm43_vm0, %v2720_v1, 0.0  ;;  %v2730_v52 = vmul.f32 %v2720_v1, %v2720_v1 }
0x11fe   :  { %2732 = vadd.xlane.f32.xlu1 %v2731_v3  ;;  %2725 = vadd.xlane.f32.xlu0 %v2724_v48 }
0x11ff   :  { %v2734_v5 = vsel %vm43_vm0, %v2730_v52, 0.0 }
0x1202   :  { %2735 = vadd.xlane.f32.xlu0 %v2734_v5 }
0x1283   :  { %v2723_v4 = vpop.xlane.xlu1 %2722 }
0x1284   :  { %v2727_v8 = vmul.f32 0.03125, %v2723_v4 }
0x1286   :  { %v2739_v7 = vmul.f32 %v2727_v8, %v2727_v8  ;;  %v2745_v23 = vsub.f32 %v2719_v50, %v2727_v8 }
0x1287   :  { %v2733_v11 = vpop.xlane.xlu1 %2732  ;;  %v2726_v6 = vpop.xlane.xlu0 %2725 }
0x1288   :  { %v2737_v17 = vmul.f32 0.03125, %v2733_v11  ;;  %v2728_v38 = vmul.f32 0.03125, %v2726_v6 }
0x128a   :  { %v2741_v40 = vsub.f32 %v2737_v17, %v2739_v7  ;;  %v2740_v10 = vmul.f32 %v2728_v38, %v2728_v38  ;;  %v2746_v56 = vsub.f32 %v2720_v1, %v2728_v38 }
0x128b   :  { %v2736_v42 = vpop.xlane.xlu0 %2735 }
0x128c   :  { %v2743_v37 = vmax.f32 %v2741_v40, 0.0  ;;  %v2738_v15 = vmul.f32 0.03125, %v2736_v42 }
0x128e   :  { %v2747_v43 = vadd.f32 1e-12, %v2743_v37  ;;  %v2742_v19 = vsub.f32 %v2738_v15, %v2740_v10 }
0x1290   :  { %3382 = vrsqrt.f32 %v2747_v43  ;;  %v2744_v21 = vmax.f32 %v2742_v19, 0.0 }
0x1292   :  { %v2748_v12 = vadd.f32 1e-12, %v2744_v21 }
0x1294   :  { %3384 = vrsqrt.f32 %v2748_v12 }
0x129d   :  { %v3383_v22 = vpop.eup %3382 }
0x129e   :  { %v2751_v24 = vmul.f32 %v3383_v22, %v2745_v23 }
0x12a0   :  { %v2757_v13 = vmul.f32 %v2756_v59, %v2751_v24 }
0x12a1   :  { %v3385_v25 = vpop.eup %3384 }
0x12a2   :  { %v2752_v27 = vmul.f32 %v3385_v25, %v2746_v56  ;;  %v2763_v55 = vadd.f32 %v2762_v2, %v2757_v13 }
0x12a4   :  { %v2758_v26 = vmul.f32 %v2756_v59, %v2752_v27 }
0x12a6   :  { %v2764_v16 = vadd.f32 %v2762_v2, %v2758_v26 }
0x12a8   :  { %v2766_v54 = vrot.slane %v2764_v16, 7 }
0x12aa   :  { %v2769_v62 = vsel %vm2768_vm7, %v2763_v55, %v2766_v54 }
0x12ab   :  { %2771 = vst.msk [vmem:[#allocation2] sm:$0x3] %vm2770_vm8, %v2769_v62 }
0x12ac   :  { %3406 = shalt.err (!%p3403_p4)
}
0x12ad   :  { %2781 = dma.vmem_to_hbm [thread:$0]  %s2779_s19, 32, %s4186_s8, [#allocation3]  }
0x12ae   :  { %3415 = dma.done.wait [#allocation3], 32  }
0x12af   :  { %3416 = vsyncadd [#allocation3], 4294967264 }
0x12b0   :  { %2785 = vsyncpa [#allocation3], 1 }

</bundles_post_ra>
